<compile_context>
chip_gen: v5e
topology: v5e:2x2
jax: 0.10.0
libtpu: 0.0.40
codegen_flags: <defaults>
</compile_context>

<pallas_src>
import functools

import jax
import jax.numpy as jnp
from jax.experimental import pallas as pl
from jax.experimental.pallas import tpu as pltpu

N_SCALES = 4   # GMLoss(4) inside SSIMSELoss
ALPHA = 0.5    # SSIMSELoss default
_OUT_LANES = 128


def _ssimse_kernel(p_ref, t_ref, out_ref, d_scr, *, alpha, batch, bt, dims):
    """One grid step: `bt` batch elements' share of the SSI-MSE + GM loss."""
    H, W = dims
    hw = float(H * W)

    # Hoisted per-scale column (lane) masks.  JAX does not CSE
    # broadcast_in_dim, so these must not live inside the unrolled loops.
    # Float masks (multiply) instead of bool selects: same VPU cost, simplest
    # sublane-broadcast lowering.
    gx_fmask = {}
    gy_fmask = {}
    if alpha > 0.0:
        ci = jax.lax.broadcasted_iota(jnp.int32, (1, W), 1)
        for i in range(1, N_SCALES):
            step = 1 << i
            keep = ((ci & (step - 1)) == 0).astype(jnp.float32)   # (1, W)
            gy_fmask[step] = keep
            if W - step >= 1:
                gx_fmask[step] = keep[:, :W - step]               # (1, W-step)

    total = jnp.float32(0.0)
    for b in range(bt):
        p = p_ref[b].astype(jnp.float32)     # (H, W)
        t = t_ref[b].astype(jnp.float32)     # (H, W)

        # Streaming moments (single pass over p, t).  `tt` lets us evaluate
        # sum(d^2) in closed form, removing a full-image multiply + reduce.
        # TODO(synk): route these reductions through the MXU (dot with a ones
        # matrix) if a bundle dump shows the XLU reduce path saturating.
        a00 = jnp.sum(p * p)
        a01 = jnp.sum(p)
        b0 = jnp.sum(p * t)
        b1 = jnp.sum(t)
        tt = jnp.sum(t * t)

        # Closed-form 2x2 least-squares solve for per-image scale/shift.
        det = a00 * hw - a01 * a01           # a11 == sum(ones) == H*W
        nz = det != 0.0
        safe_det = jnp.where(nz, det, 1.0)
        x0 = jnp.where(nz, (hw * b0 - a01 * b1) / safe_det, 0.0)    # scale
        x1 = jnp.where(nz, (-a01 * b0 + a00 * b1) / safe_det, 0.0)  # shift

        # sum(d^2) with d = x0*p + x1 - t, expanded through the moments.
        sse = (x0 * x0 * a00 + x1 * x1 * hw + tt
               + 2.0 * x0 * x1 * a01 - 2.0 * x0 * b0 - 2.0 * x1 * b1)
        total = total + sse / hw * 0.5 / batch

        if alpha > 0.0:
            # Full-res residual, staged once into VMEM scratch so the coarse
            # scales can be read back with cheap sublane strides.  Note
            # prediction_ssi[::s, ::s] - target[::s, ::s] == d[::s, ::s].
            d = x0 * p + x1 - t
            d_scr[...] = d

            gm = jnp.float32(0.0)
            for i in range(N_SCALES):
                step = 1 << i                 # power of 2
                hs = -(-H // step)            # ceil(H / step)
                ws = -(-W // step)            # ceil(W / step)
                numel = batch * float(hs * ws)
                scale_sum = jnp.float32(0.0)
                if step == 1:
                    # Scale 0: use the resident value directly, no masks.
                    if W >= 2:
                        gx = jnp.abs(d[:, 1:] - d[:, :W - 1])
                        scale_sum = scale_sum + jnp.sum(gx)
                    if H >= 2:
                        gy = jnp.abs(d[1:, :] - d[:H - 1, :])
                        scale_sum = scale_sum + jnp.sum(gy)
                else:
                    if W - step >= 1:
                        # Row-subsampled read (stride along sublanes), then a
                        # lane-shifted diff; only a column mask is needed.
                        rows = d_scr[pl.ds(0, hs, stride=step), :]      # (hs, W)
                        gx = jnp.abs(rows[:, step:] - rows[:, :W - step])
                        scale_sum = scale_sum + jnp.sum(gx * gx_fmask[step])
                    if hs >= 2:
                        top = d_scr[pl.ds(0, hs - 1, stride=step), :]   # (hs-1, W)
                        bot = d_scr[pl.ds(step, hs - 1, stride=step), :]
                        gy = jnp.abs(bot - top)
                        scale_sum = scale_sum + jnp.sum(gy * gy_fmask[step])
                gm = gm + scale_sum / numel
            total = total + alpha * gm

    # Lane-dense output block: broadcast the scalar across 128 lanes so the
    # store is an unmasked vst; wrapper reads column 0.
    out_ref[...] = jnp.zeros_like(out_ref) + total


def _vmem_capacity_bytes():
    try:
        return int(pltpu.get_tpu_info().vmem_capacity_bytes)
    except Exception:
        return 64 << 20   # conservative fallback (v7x physical VMEM per TC)


def ssimse_loss(prediction, target, alpha=ALPHA):
    B, H, W = prediction.shape
    assert target.shape == prediction.shape

    cap = _vmem_capacity_bytes()
    limit_cap = int(cap) * 3 // 4          # never request more than ~75% of VMEM

    # Footprint model: 2 inputs x 2 pipeline buffers x f32 block, plus the
    # residual scratch and ~3 live (H, W) gx/gy temporaries, plus headroom.
    per_elem = 16 * H * W                  # bytes per packed batch element
    fixed = 16 * H * W + (2 << 20)

    # Pack Bt batch elements per grid step (Bt must divide B -> no partial
    # blocks), bounded by the VMEM budget.  Amortizes per-step overhead for
    # small images while keeping the batch grid axis "parallel".
    bt = 1
    for cand in range(1, min(B, 8) + 1):
        if B % cand == 0 and cand * per_elem + fixed <= limit_cap:
            bt = cand
    grid = B // bt

    vmem_limit = int(min(max(bt * per_elem + fixed, 32 << 20), limit_cap))
    # TODO(synk): for images so large that bt=1 exceeds the budget (e.g.
    # >~1k x 1k on v7x's 64 MiB VMEM), switch to a row-tiled two-phase variant
    # (moment pass + haloed residual/GM pass) instead of one (bt, H, W) block.
    # TODO(synk): for W << 128, a wrapper-side lane-dense (B, H*W//128, 128)
    # view of p/t for the moment pass would recover lane utilization.

    kernel = functools.partial(
        _ssimse_kernel, alpha=float(alpha), batch=float(B), bt=bt, dims=(H, W))

    in_spec = pl.BlockSpec((bt, H, W), lambda g: (g, 0, 0))
    out = pl.pallas_call(
        kernel,
        out_shape=jax.ShapeDtypeStruct((grid, _OUT_LANES), jnp.float32),
        grid_spec=pltpu.PrefetchScalarGridSpec(
            num_scalar_prefetch=0,
            grid=(grid,),
            in_specs=[in_spec, in_spec],
            out_specs=pl.BlockSpec((1, _OUT_LANES), lambda g: (g, 0)),
            scratch_shapes=[pltpu.VMEM((H, W), jnp.float32)],
        ),
        compiler_params=pltpu.CompilerParams(
            dimension_semantics=("parallel",),
            vmem_limit_bytes=vmem_limit,
        ),
    )(prediction, target)
    return jnp.sum(out[:, 0])


def _reference(pred, tgt, alpha=ALPHA):
    # Pure-JAX reference mirroring the PyTorch module (for correctness check).
    a00 = jnp.sum(pred * pred, (1, 2))
    a01 = jnp.sum(pred, (1, 2))
    a11 = jnp.sum(jnp.ones_like(tgt), (1, 2))
    b0 = jnp.sum(pred * tgt, (1, 2))
    b1 = jnp.sum(tgt, (1, 2))
    det = a00 * a11 - a01 * a01
    nz = det != 0
    sd = jnp.where(nz, det, 1.0)
    x0 = jnp.where(nz, (a11 * b0 - a01 * b1) / sd, 0.0)
    x1 = jnp.where(nz, (-a01 * b0 + a00 * b1) / sd, 0.0)
    ssi = x0[:, None, None] * pred + x1[:, None, None]
    res = ssi - tgt
    loss = jnp.mean(jnp.mean(res * res, (1, 2)) / 2)

    def gm(p, t):
        d = p - t
        gx = jnp.abs(d[:, :, 1:] - d[:, :, :-1])
        gy = jnp.abs(d[:, 1:, :] - d[:, :-1, :])
        return jnp.sum(jnp.sum(gx, (1, 2)) + jnp.sum(gy, (1, 2))) / t.size

    total = gm(ssi, tgt)
    for i in range(1, N_SCALES):
        st = 2 ** i
        total += gm(ssi[:, ::st, ::st], tgt[:, ::st, ::st])
    return loss + alpha * total


if __name__ == "__main__":
    key = jax.random.PRNGKey(0)
    k1, k2 = jax.random.split(key)
    B, H, W = 2, 16, 16
    prediction = jax.random.normal(k1, (B, H, W), dtype=jnp.float32)
    target = jax.random.normal(k2, (B, H, W), dtype=jnp.float32)

    out = ssimse_loss(prediction, target)
    jax.block_until_ready(out)

    ref = _reference(prediction, target)
    assert jnp.allclose(out, ref, rtol=1e-4, atol=1e-4), (float(out), float(ref))
    print("KERNEL_OK")
</pallas_src>

<mosaic_0001>
module attributes {stable_mosaic.version = 11 : i64} {
  func.func @_ssimse_kernel(%arg0: i32, %arg1: memref<2x16x16xf32, #tpu.memory_space<vmem>>, %arg2: memref<2x16x16xf32, #tpu.memory_space<vmem>>, %arg3: memref<1x128xf32, #tpu.memory_space<vmem>>, %arg4: memref<16x16xf32, #tpu.memory_space<vmem>>) attributes {dimension_semantics = [#tpu.dimension_semantics<parallel>], iteration_bounds = array<i64: 1>, scalar_prefetch = 0 : i64, scratch_operands = 1 : i64, tpu.core_type = #tpu.core_type<tc>, window_params = [{transform_indices = @transform_0, window_bounds = array<i64: 2, 16, 16>}, {transform_indices = @transform_1, window_bounds = array<i64: 2, 16, 16>}, {transform_indices = @transform_2, window_bounds = array<i64: 1, 128>}]} {
    %0 = tpu.iota {dimensions = array<i32: 1>} : vector<1x16xi32>
    %c1_i32 = arith.constant 1 : i32
    %1 = vector.broadcast %c1_i32 : i32 to vector<1x16xi32>
    %2 = arith.andi %0, %1 : vector<1x16xi32>
    %c0_i32 = arith.constant 0 : i32
    %3 = vector.broadcast %c0_i32 : i32 to vector<1x16xi32>
    %4 = arith.cmpi eq, %2, %3 : vector<1x16xi32>
    %5 = arith.extui %4 : vector<1x16xi1> to vector<1x16xi32>
    %6 = arith.sitofp %5 : vector<1x16xi32> to vector<1x16xf32>
    %7 = vector.extract_strided_slice %6 {offsets = [0, 0], sizes = [1, 14], strides = [1, 1]} : vector<1x16xf32> to vector<1x14xf32>
    %c3_i32 = arith.constant 3 : i32
    %8 = vector.broadcast %c3_i32 : i32 to vector<1x16xi32>
    %9 = arith.andi %0, %8 : vector<1x16xi32>
    %c0_i32_0 = arith.constant 0 : i32
    %10 = vector.broadcast %c0_i32_0 : i32 to vector<1x16xi32>
    %11 = arith.cmpi eq, %9, %10 : vector<1x16xi32>
    %12 = arith.extui %11 : vector<1x16xi1> to vector<1x16xi32>
    %13 = arith.sitofp %12 : vector<1x16xi32> to vector<1x16xf32>
    %14 = vector.extract_strided_slice %13 {offsets = [0, 0], sizes = [1, 12], strides = [1, 1]} : vector<1x16xf32> to vector<1x12xf32>
    %c7_i32 = arith.constant 7 : i32
    %15 = vector.broadcast %c7_i32 : i32 to vector<1x16xi32>
    %16 = arith.andi %0, %15 : vector<1x16xi32>
    %c0_i32_1 = arith.constant 0 : i32
    %17 = vector.broadcast %c0_i32_1 : i32 to vector<1x16xi32>
    %18 = arith.cmpi eq, %16, %17 : vector<1x16xi32>
    %19 = arith.extui %18 : vector<1x16xi1> to vector<1x16xi32>
    %20 = arith.sitofp %19 : vector<1x16xi32> to vector<1x16xf32>
    %21 = vector.extract_strided_slice %20 {offsets = [0, 0], sizes = [1, 8], strides = [1, 1]} : vector<1x16xf32> to vector<1x8xf32>
    %c0 = arith.constant 0 : index
    %c0_2 = arith.constant 0 : index
    %c0_3 = arith.constant 0 : index
    %22 = vector.load %arg1[%c0, %c0_2, %c0_3] : memref<2x16x16xf32, #tpu.memory_space<vmem>>, vector<1x16x16xf32>
    %23 = vector.shape_cast %22 : vector<1x16x16xf32> to vector<16x16xf32>
    %c0_4 = arith.constant 0 : index
    %c0_5 = arith.constant 0 : index
    %c0_6 = arith.constant 0 : index
    %24 = vector.load %arg2[%c0_4, %c0_5, %c0_6] : memref<2x16x16xf32, #tpu.memory_space<vmem>>, vector<1x16x16xf32>
    %25 = vector.shape_cast %24 : vector<1x16x16xf32> to vector<16x16xf32>
    %26 = arith.mulf %23, %23 : vector<16x16xf32>
    %27 = vector.shape_cast %26 : vector<16x16xf32> to vector<1x16x16xf32>
    %cst = arith.constant dense<0.000000e+00> : vector<1xf32>
    %28 = vector.multi_reduction <add>, %27, %cst [1, 2] : vector<1x16x16xf32> to vector<1xf32>
    %29 = vector.shape_cast %28 : vector<1xf32> to vector<1x1x1xf32>
    %30 = vector.extract %29[0, 0, 0] : f32 from vector<1x1x1xf32>
    %31 = vector.shape_cast %23 : vector<16x16xf32> to vector<1x16x16xf32>
    %cst_7 = arith.constant dense<0.000000e+00> : vector<1xf32>
    %32 = vector.multi_reduction <add>, %31, %cst_7 [1, 2] : vector<1x16x16xf32> to vector<1xf32>
    %33 = vector.shape_cast %32 : vector<1xf32> to vector<1x1x1xf32>
    %34 = vector.extract %33[0, 0, 0] : f32 from vector<1x1x1xf32>
    %35 = arith.mulf %23, %25 : vector<16x16xf32>
    %36 = vector.shape_cast %35 : vector<16x16xf32> to vector<1x16x16xf32>
    %cst_8 = arith.constant dense<0.000000e+00> : vector<1xf32>
    %37 = vector.multi_reduction <add>, %36, %cst_8 [1, 2] : vector<1x16x16xf32> to vector<1xf32>
    %38 = vector.shape_cast %37 : vector<1xf32> to vector<1x1x1xf32>
    %39 = vector.extract %38[0, 0, 0] : f32 from vector<1x1x1xf32>
    %40 = vector.shape_cast %25 : vector<16x16xf32> to vector<1x16x16xf32>
    %cst_9 = arith.constant dense<0.000000e+00> : vector<1xf32>
    %41 = vector.multi_reduction <add>, %40, %cst_9 [1, 2] : vector<1x16x16xf32> to vector<1xf32>
    %42 = vector.shape_cast %41 : vector<1xf32> to vector<1x1x1xf32>
    %43 = vector.extract %42[0, 0, 0] : f32 from vector<1x1x1xf32>
    %44 = arith.mulf %25, %25 : vector<16x16xf32>
    %45 = vector.shape_cast %44 : vector<16x16xf32> to vector<1x16x16xf32>
    %cst_10 = arith.constant dense<0.000000e+00> : vector<1xf32>
    %46 = vector.multi_reduction <add>, %45, %cst_10 [1, 2] : vector<1x16x16xf32> to vector<1xf32>
    %47 = vector.shape_cast %46 : vector<1xf32> to vector<1x1x1xf32>
    %48 = vector.extract %47[0, 0, 0] : f32 from vector<1x1x1xf32>
    %cst_11 = arith.constant 2.560000e+02 : f32
    %49 = arith.mulf %30, %cst_11 : f32
    %50 = arith.mulf %34, %34 : f32
    %51 = arith.subf %49, %50 : f32
    %cst_12 = arith.constant 0.000000e+00 : f32
    %52 = arith.cmpf one, %51, %cst_12 : f32
    %cst_13 = arith.constant 1.000000e+00 : f32
    %53 = arith.select %52, %51, %cst_13 : f32
    %cst_14 = arith.constant 2.560000e+02 : f32
    %54 = arith.mulf %cst_14, %39 : f32
    %55 = arith.mulf %34, %43 : f32
    %56 = arith.subf %54, %55 : f32
    %57 = arith.divf %56, %53 : f32
    %cst_15 = arith.constant 0.000000e+00 : f32
    %58 = arith.select %52, %57, %cst_15 : f32
    %cst_16 = arith.constant 0.000000e+00 : f32
    %59 = arith.subf %cst_16, %34 : f32
    %60 = arith.mulf %59, %39 : f32
    %61 = arith.mulf %30, %43 : f32
    %62 = arith.addf %60, %61 : f32
    %63 = arith.divf %62, %53 : f32
    %cst_17 = arith.constant 0.000000e+00 : f32
    %64 = arith.select %52, %63, %cst_17 : f32
    %65 = arith.mulf %58, %58 : f32
    %66 = arith.mulf %65, %30 : f32
    %67 = arith.mulf %64, %64 : f32
    %cst_18 = arith.constant 2.560000e+02 : f32
    %68 = arith.mulf %67, %cst_18 : f32
    %69 = arith.addf %66, %68 : f32
    %70 = arith.addf %69, %48 : f32
    %cst_19 = arith.constant 2.000000e+00 : f32
    %71 = arith.mulf %cst_19, %58 : f32
    %72 = arith.mulf %71, %64 : f32
    %73 = arith.mulf %72, %34 : f32
    %74 = arith.addf %70, %73 : f32
    %cst_20 = arith.constant 2.000000e+00 : f32
    %75 = arith.mulf %cst_20, %58 : f32
    %76 = arith.mulf %75, %39 : f32
    %77 = arith.subf %74, %76 : f32
    %cst_21 = arith.constant 2.000000e+00 : f32
    %78 = arith.mulf %cst_21, %64 : f32
    %79 = arith.mulf %78, %43 : f32
    %80 = arith.subf %77, %79 : f32
    %cst_22 = arith.constant 2.560000e+02 : f32
    %81 = arith.divf %80, %cst_22 : f32
    %cst_23 = arith.constant 5.000000e-01 : f32
    %82 = arith.mulf %81, %cst_23 : f32
    %cst_24 = arith.constant 2.000000e+00 : f32
    %83 = arith.divf %82, %cst_24 : f32
    %cst_25 = arith.constant 0.000000e+00 : f32
    %84 = arith.addf %cst_25, %83 : f32
    %85 = vector.broadcast %58 : f32 to vector<16x16xf32>
    %86 = arith.mulf %85, %23 : vector<16x16xf32>
    %87 = vector.broadcast %64 : f32 to vector<16x16xf32>
    %88 = arith.addf %86, %87 : vector<16x16xf32>
    %89 = arith.subf %88, %25 : vector<16x16xf32>
    %c0_26 = arith.constant 0 : index
    %c0_27 = arith.constant 0 : index
    %90 = vector.load %arg4[%c0_26, %c0_27] : memref<16x16xf32, #tpu.memory_space<vmem>>, vector<16x16xf32>
    tpu.vector_store %arg4[%c0_26, %c0_27], %89 {strides = array<i32>} : memref<16x16xf32, #tpu.memory_space<vmem>>, vector<16x16xf32>,
    %91 = vector.extract_strided_slice %89 {offsets = [0, 1], sizes = [16, 15], strides = [1, 1]} : vector<16x16xf32> to vector<16x15xf32>
    %92 = vector.extract_strided_slice %89 {offsets = [0, 0], sizes = [16, 15], strides = [1, 1]} : vector<16x16xf32> to vector<16x15xf32>
    %93 = arith.subf %91, %92 : vector<16x15xf32>
    %94 = math.absf %93 : vector<16x15xf32>
    %95 = vector.shape_cast %94 : vector<16x15xf32> to vector<1x16x15xf32>
    %cst_28 = arith.constant dense<0.000000e+00> : vector<1xf32>
    %96 = vector.multi_reduction <add>, %95, %cst_28 [1, 2] : vector<1x16x15xf32> to vector<1xf32>
    %97 = vector.shape_cast %96 : vector<1xf32> to vector<1x1x1xf32>
    %98 = vector.extract %97[0, 0, 0] : f32 from vector<1x1x1xf32>
    %cst_29 = arith.constant 0.000000e+00 : f32
    %99 = arith.addf %cst_29, %98 : f32
    %100 = vector.extract_strided_slice %89 {offsets = [1, 0], sizes = [15, 16], strides = [1, 1]} : vector<16x16xf32> to vector<15x16xf32>
    %101 = vector.extract_strided_slice %89 {offsets = [0, 0], sizes = [15, 16], strides = [1, 1]} : vector<16x16xf32> to vector<15x16xf32>
    %102 = arith.subf %100, %101 : vector<15x16xf32>
    %103 = math.absf %102 : vector<15x16xf32>
    %104 = vector.shape_cast %103 : vector<15x16xf32> to vector<1x15x16xf32>
    %cst_30 = arith.constant dense<0.000000e+00> : vector<1xf32>
    %105 = vector.multi_reduction <add>, %104, %cst_30 [1, 2] : vector<1x15x16xf32> to vector<1xf32>
    %106 = vector.shape_cast %105 : vector<1xf32> to vector<1x1x1xf32>
    %107 = vector.extract %106[0, 0, 0] : f32 from vector<1x1x1xf32>
    %108 = arith.addf %99, %107 : f32
    %cst_31 = arith.constant 5.120000e+02 : f32
    %109 = arith.divf %108, %cst_31 : f32
    %cst_32 = arith.constant 0.000000e+00 : f32
    %110 = arith.addf %cst_32, %109 : f32
    %c0_33 = arith.constant 0 : index
    %c0_34 = arith.constant 0 : index
    %111 = tpu.strided_load %arg4[%c0_33, %c0_34] {strides = array<i32: 2, 1>} : memref<16x16xf32, #tpu.memory_space<vmem>>, vector<8x16xf32>
    %112 = vector.extract_strided_slice %111 {offsets = [0, 2], sizes = [8, 14], strides = [1, 1]} : vector<8x16xf32> to vector<8x14xf32>
    %113 = vector.extract_strided_slice %111 {offsets = [0, 0], sizes = [8, 14], strides = [1, 1]} : vector<8x16xf32> to vector<8x14xf32>
    %114 = arith.subf %112, %113 : vector<8x14xf32>
    %115 = math.absf %114 : vector<8x14xf32>
    %116 = vector.broadcast %7 : vector<1x14xf32> to vector<8x14xf32>
    %117 = arith.mulf %115, %116 : vector<8x14xf32>
    %118 = vector.shape_cast %117 : vector<8x14xf32> to vector<1x8x14xf32>
    %cst_35 = arith.constant dense<0.000000e+00> : vector<1xf32>
    %119 = vector.multi_reduction <add>, %118, %cst_35 [1, 2] : vector<1x8x14xf32> to vector<1xf32>
    %120 = vector.shape_cast %119 : vector<1xf32> to vector<1x1x1xf32>
    %121 = vector.extract %120[0, 0, 0] : f32 from vector<1x1x1xf32>
    %cst_36 = arith.constant 0.000000e+00 : f32
    %122 = arith.addf %cst_36, %121 : f32
    %c0_37 = arith.constant 0 : index
    %c0_38 = arith.constant 0 : index
    %123 = tpu.strided_load %arg4[%c0_37, %c0_38] {strides = array<i32: 2, 1>} : memref<16x16xf32, #tpu.memory_space<vmem>>, vector<7x16xf32>
    %c2 = arith.constant 2 : index
    %c0_39 = arith.constant 0 : index
    %124 = tpu.strided_load %arg4[%c2, %c0_39] {strides = array<i32: 2, 1>} : memref<16x16xf32, #tpu.memory_space<vmem>>, vector<7x16xf32>
    %125 = arith.subf %124, %123 : vector<7x16xf32>
    %126 = math.absf %125 : vector<7x16xf32>
    %127 = vector.broadcast %6 : vector<1x16xf32> to vector<7x16xf32>
    %128 = arith.mulf %126, %127 : vector<7x16xf32>
    %129 = vector.shape_cast %128 : vector<7x16xf32> to vector<1x7x16xf32>
    %cst_40 = arith.constant dense<0.000000e+00> : vector<1xf32>
    %130 = vector.multi_reduction <add>, %129, %cst_40 [1, 2] : vector<1x7x16xf32> to vector<1xf32>
    %131 = vector.shape_cast %130 : vector<1xf32> to vector<1x1x1xf32>
    %132 = vector.extract %131[0, 0, 0] : f32 from vector<1x1x1xf32>
    %133 = arith.addf %122, %132 : f32
    %cst_41 = arith.constant 1.280000e+02 : f32
    %134 = arith.divf %133, %cst_41 : f32
    %135 = arith.addf %110, %134 : f32
    %c0_42 = arith.constant 0 : index
    %c0_43 = arith.constant 0 : index
    %136 = tpu.strided_load %arg4[%c0_42, %c0_43] {strides = array<i32: 4, 1>} : memref<16x16xf32, #tpu.memory_space<vmem>>, vector<4x16xf32>
    %137 = vector.extract_strided_slice %136 {offsets = [0, 4], sizes = [4, 12], strides = [1, 1]} : vector<4x16xf32> to vector<4x12xf32>
    %138 = vector.extract_strided_slice %136 {offsets = [0, 0], sizes = [4, 12], strides = [1, 1]} : vector<4x16xf32> to vector<4x12xf32>
    %139 = arith.subf %137, %138 : vector<4x12xf32>
    %140 = math.absf %139 : vector<4x12xf32>
    %141 = vector.broadcast %14 : vector<1x12xf32> to vector<4x12xf32>
    %142 = arith.mulf %140, %141 : vector<4x12xf32>
    %143 = vector.shape_cast %142 : vector<4x12xf32> to vector<1x4x12xf32>
    %cst_44 = arith.constant dense<0.000000e+00> : vector<1xf32>
    %144 = vector.multi_reduction <add>, %143, %cst_44 [1, 2] : vector<1x4x12xf32> to vector<1xf32>
    %145 = vector.shape_cast %144 : vector<1xf32> to vector<1x1x1xf32>
    %146 = vector.extract %145[0, 0, 0] : f32 from vector<1x1x1xf32>
    %cst_45 = arith.constant 0.000000e+00 : f32
    %147 = arith.addf %cst_45, %146 : f32
    %c0_46 = arith.constant 0 : index
    %c0_47 = arith.constant 0 : index
    %148 = tpu.strided_load %arg4[%c0_46, %c0_47] {strides = array<i32: 4, 1>} : memref<16x16xf32, #tpu.memory_space<vmem>>, vector<3x16xf32>
    %c4 = arith.constant 4 : index
    %c0_48 = arith.constant 0 : index
    %149 = tpu.strided_load %arg4[%c4, %c0_48] {strides = array<i32: 4, 1>} : memref<16x16xf32, #tpu.memory_space<vmem>>, vector<3x16xf32>
    %150 = arith.subf %149, %148 : vector<3x16xf32>
    %151 = math.absf %150 : vector<3x16xf32>
    %152 = vector.broadcast %13 : vector<1x16xf32> to vector<3x16xf32>
    %153 = arith.mulf %151, %152 : vector<3x16xf32>
    %154 = vector.shape_cast %153 : vector<3x16xf32> to vector<1x3x16xf32>
    %cst_49 = arith.constant dense<0.000000e+00> : vector<1xf32>
    %155 = vector.multi_reduction <add>, %154, %cst_49 [1, 2] : vector<1x3x16xf32> to vector<1xf32>
    %156 = vector.shape_cast %155 : vector<1xf32> to vector<1x1x1xf32>
    %157 = vector.extract %156[0, 0, 0] : f32 from vector<1x1x1xf32>
    %158 = arith.addf %147, %157 : f32
    %cst_50 = arith.constant 3.200000e+01 : f32
    %159 = arith.divf %158, %cst_50 : f32
    %160 = arith.addf %135, %159 : f32
    %c0_51 = arith.constant 0 : index
    %c0_52 = arith.constant 0 : index
    %161 = tpu.strided_load %arg4[%c0_51, %c0_52] {strides = array<i32: 8, 1>} : memref<16x16xf32, #tpu.memory_space<vmem>>, vector<2x16xf32>
    %162 = vector.extract_strided_slice %161 {offsets = [0, 8], sizes = [2, 8], strides = [1, 1]} : vector<2x16xf32> to vector<2x8xf32>
    %163 = vector.extract_strided_slice %161 {offsets = [0, 0], sizes = [2, 8], strides = [1, 1]} : vector<2x16xf32> to vector<2x8xf32>
    %164 = arith.subf %162, %163 : vector<2x8xf32>
    %165 = math.absf %164 : vector<2x8xf32>
    %166 = vector.broadcast %21 : vector<1x8xf32> to vector<2x8xf32>
    %167 = arith.mulf %165, %166 : vector<2x8xf32>
    %168 = vector.shape_cast %167 : vector<2x8xf32> to vector<1x2x8xf32>
    %cst_53 = arith.constant dense<0.000000e+00> : vector<1xf32>
    %169 = vector.multi_reduction <add>, %168, %cst_53 [1, 2] : vector<1x2x8xf32> to vector<1xf32>
    %170 = vector.shape_cast %169 : vector<1xf32> to vector<1x1x1xf32>
    %171 = vector.extract %170[0, 0, 0] : f32 from vector<1x1x1xf32>
    %cst_54 = arith.constant 0.000000e+00 : f32
    %172 = arith.addf %cst_54, %171 : f32
    %c0_55 = arith.constant 0 : index
    %c0_56 = arith.constant 0 : index
    %173 = tpu.strided_load %arg4[%c0_55, %c0_56] {strides = array<i32: 8, 1>} : memref<16x16xf32, #tpu.memory_space<vmem>>, vector<1x16xf32>
    %c8 = arith.constant 8 : index
    %c0_57 = arith.constant 0 : index
    %174 = tpu.strided_load %arg4[%c8, %c0_57] {strides = array<i32: 8, 1>} : memref<16x16xf32, #tpu.memory_space<vmem>>, vector<1x16xf32>
    %175 = arith.subf %174, %173 : vector<1x16xf32>
    %176 = math.absf %175 : vector<1x16xf32>
    %177 = arith.mulf %176, %20 : vector<1x16xf32>
    %178 = vector.shape_cast %177 : vector<1x16xf32> to vector<1x1x16xf32>
    %cst_58 = arith.constant dense<0.000000e+00> : vector<1xf32>
    %179 = vector.multi_reduction <add>, %178, %cst_58 [1, 2] : vector<1x1x16xf32> to vector<1xf32>
    %180 = vector.shape_cast %179 : vector<1xf32> to vector<1x1x1xf32>
    %181 = vector.extract %180[0, 0, 0] : f32 from vector<1x1x1xf32>
    %182 = arith.addf %172, %181 : f32
    %cst_59 = arith.constant 8.000000e+00 : f32
    %183 = arith.divf %182, %cst_59 : f32
    %184 = arith.addf %160, %183 : f32
    %cst_60 = arith.constant 5.000000e-01 : f32
    %185 = arith.mulf %cst_60, %184 : f32
    %186 = arith.addf %84, %185 : f32
    %c1 = arith.constant 1 : index
    %c0_61 = arith.constant 0 : index
    %c0_62 = arith.constant 0 : index
    %187 = vector.load %arg1[%c1, %c0_61, %c0_62] : memref<2x16x16xf32, #tpu.memory_space<vmem>>, vector<1x16x16xf32>
    %188 = vector.shape_cast %187 : vector<1x16x16xf32> to vector<16x16xf32>
    %c1_63 = arith.constant 1 : index
    %c0_64 = arith.constant 0 : index
    %c0_65 = arith.constant 0 : index
    %189 = vector.load %arg2[%c1_63, %c0_64, %c0_65] : memref<2x16x16xf32, #tpu.memory_space<vmem>>, vector<1x16x16xf32>
    %190 = vector.shape_cast %189 : vector<1x16x16xf32> to vector<16x16xf32>
    %191 = arith.mulf %188, %188 : vector<16x16xf32>
    %192 = vector.shape_cast %191 : vector<16x16xf32> to vector<1x16x16xf32>
    %cst_66 = arith.constant dense<0.000000e+00> : vector<1xf32>
    %193 = vector.multi_reduction <add>, %192, %cst_66 [1, 2] : vector<1x16x16xf32> to vector<1xf32>
    %194 = vector.shape_cast %193 : vector<1xf32> to vector<1x1x1xf32>
    %195 = vector.extract %194[0, 0, 0] : f32 from vector<1x1x1xf32>
    %196 = vector.shape_cast %188 : vector<16x16xf32> to vector<1x16x16xf32>
    %cst_67 = arith.constant dense<0.000000e+00> : vector<1xf32>
    %197 = vector.multi_reduction <add>, %196, %cst_67 [1, 2] : vector<1x16x16xf32> to vector<1xf32>
    %198 = vector.shape_cast %197 : vector<1xf32> to vector<1x1x1xf32>
    %199 = vector.extract %198[0, 0, 0] : f32 from vector<1x1x1xf32>
    %200 = arith.mulf %188, %190 : vector<16x16xf32>
    %201 = vector.shape_cast %200 : vector<16x16xf32> to vector<1x16x16xf32>
    %cst_68 = arith.constant dense<0.000000e+00> : vector<1xf32>
    %202 = vector.multi_reduction <add>, %201, %cst_68 [1, 2] : vector<1x16x16xf32> to vector<1xf32>
    %203 = vector.shape_cast %202 : vector<1xf32> to vector<1x1x1xf32>
    %204 = vector.extract %203[0, 0, 0] : f32 from vector<1x1x1xf32>
    %205 = vector.shape_cast %190 : vector<16x16xf32> to vector<1x16x16xf32>
    %cst_69 = arith.constant dense<0.000000e+00> : vector<1xf32>
    %206 = vector.multi_reduction <add>, %205, %cst_69 [1, 2] : vector<1x16x16xf32> to vector<1xf32>
    %207 = vector.shape_cast %206 : vector<1xf32> to vector<1x1x1xf32>
    %208 = vector.extract %207[0, 0, 0] : f32 from vector<1x1x1xf32>
    %209 = arith.mulf %190, %190 : vector<16x16xf32>
    %210 = vector.shape_cast %209 : vector<16x16xf32> to vector<1x16x16xf32>
    %cst_70 = arith.constant dense<0.000000e+00> : vector<1xf32>
    %211 = vector.multi_reduction <add>, %210, %cst_70 [1, 2] : vector<1x16x16xf32> to vector<1xf32>
    %212 = vector.shape_cast %211 : vector<1xf32> to vector<1x1x1xf32>
    %213 = vector.extract %212[0, 0, 0] : f32 from vector<1x1x1xf32>
    %cst_71 = arith.constant 2.560000e+02 : f32
    %214 = arith.mulf %195, %cst_71 : f32
    %215 = arith.mulf %199, %199 : f32
    %216 = arith.subf %214, %215 : f32
    %cst_72 = arith.constant 0.000000e+00 : f32
    %217 = arith.cmpf one, %216, %cst_72 : f32
    %cst_73 = arith.constant 1.000000e+00 : f32
    %218 = arith.select %217, %216, %cst_73 : f32
    %cst_74 = arith.constant 2.560000e+02 : f32
    %219 = arith.mulf %cst_74, %204 : f32
    %220 = arith.mulf %199, %208 : f32
    %221 = arith.subf %219, %220 : f32
    %222 = arith.divf %221, %218 : f32
    %cst_75 = arith.constant 0.000000e+00 : f32
    %223 = arith.select %217, %222, %cst_75 : f32
    %cst_76 = arith.constant 0.000000e+00 : f32
    %224 = arith.subf %cst_76, %199 : f32
    %225 = arith.mulf %224, %204 : f32
    %226 = arith.mulf %195, %208 : f32
    %227 = arith.addf %225, %226 : f32
    %228 = arith.divf %227, %218 : f32
    %cst_77 = arith.constant 0.000000e+00 : f32
    %229 = arith.select %217, %228, %cst_77 : f32
    %230 = arith.mulf %223, %223 : f32
    %231 = arith.mulf %230, %195 : f32
    %232 = arith.mulf %229, %229 : f32
    %cst_78 = arith.constant 2.560000e+02 : f32
    %233 = arith.mulf %232, %cst_78 : f32
    %234 = arith.addf %231, %233 : f32
    %235 = arith.addf %234, %213 : f32
    %cst_79 = arith.constant 2.000000e+00 : f32
    %236 = arith.mulf %cst_79, %223 : f32
    %237 = arith.mulf %236, %229 : f32
    %238 = arith.mulf %237, %199 : f32
    %239 = arith.addf %235, %238 : f32
    %cst_80 = arith.constant 2.000000e+00 : f32
    %240 = arith.mulf %cst_80, %223 : f32
    %241 = arith.mulf %240, %204 : f32
    %242 = arith.subf %239, %241 : f32
    %cst_81 = arith.constant 2.000000e+00 : f32
    %243 = arith.mulf %cst_81, %229 : f32
    %244 = arith.mulf %243, %208 : f32
    %245 = arith.subf %242, %244 : f32
    %cst_82 = arith.constant 2.560000e+02 : f32
    %246 = arith.divf %245, %cst_82 : f32
    %cst_83 = arith.constant 5.000000e-01 : f32
    %247 = arith.mulf %246, %cst_83 : f32
    %cst_84 = arith.constant 2.000000e+00 : f32
    %248 = arith.divf %247, %cst_84 : f32
    %249 = arith.addf %186, %248 : f32
    %250 = vector.broadcast %223 : f32 to vector<16x16xf32>
    %251 = arith.mulf %250, %188 : vector<16x16xf32>
    %252 = vector.broadcast %229 : f32 to vector<16x16xf32>
    %253 = arith.addf %251, %252 : vector<16x16xf32>
    %254 = arith.subf %253, %190 : vector<16x16xf32>
    %c0_85 = arith.constant 0 : index
    %c0_86 = arith.constant 0 : index
    %255 = vector.load %arg4[%c0_85, %c0_86] : memref<16x16xf32, #tpu.memory_space<vmem>>, vector<16x16xf32>
    tpu.vector_store %arg4[%c0_85, %c0_86], %254 {strides = array<i32>} : memref<16x16xf32, #tpu.memory_space<vmem>>, vector<16x16xf32>,
    %256 = vector.extract_strided_slice %254 {offsets = [0, 1], sizes = [16, 15], strides = [1, 1]} : vector<16x16xf32> to vector<16x15xf32>
    %257 = vector.extract_strided_slice %254 {offsets = [0, 0], sizes = [16, 15], strides = [1, 1]} : vector<16x16xf32> to vector<16x15xf32>
    %258 = arith.subf %256, %257 : vector<16x15xf32>
    %259 = math.absf %258 : vector<16x15xf32>
    %260 = vector.shape_cast %259 : vector<16x15xf32> to vector<1x16x15xf32>
    %cst_87 = arith.constant dense<0.000000e+00> : vector<1xf32>
    %261 = vector.multi_reduction <add>, %260, %cst_87 [1, 2] : vector<1x16x15xf32> to vector<1xf32>
    %262 = vector.shape_cast %261 : vector<1xf32> to vector<1x1x1xf32>
    %263 = vector.extract %262[0, 0, 0] : f32 from vector<1x1x1xf32>
    %cst_88 = arith.constant 0.000000e+00 : f32
    %264 = arith.addf %cst_88, %263 : f32
    %265 = vector.extract_strided_slice %254 {offsets = [1, 0], sizes = [15, 16], strides = [1, 1]} : vector<16x16xf32> to vector<15x16xf32>
    %266 = vector.extract_strided_slice %254 {offsets = [0, 0], sizes = [15, 16], strides = [1, 1]} : vector<16x16xf32> to vector<15x16xf32>
    %267 = arith.subf %265, %266 : vector<15x16xf32>
    %268 = math.absf %267 : vector<15x16xf32>
    %269 = vector.shape_cast %268 : vector<15x16xf32> to vector<1x15x16xf32>
    %cst_89 = arith.constant dense<0.000000e+00> : vector<1xf32>
    %270 = vector.multi_reduction <add>, %269, %cst_89 [1, 2] : vector<1x15x16xf32> to vector<1xf32>
    %271 = vector.shape_cast %270 : vector<1xf32> to vector<1x1x1xf32>
    %272 = vector.extract %271[0, 0, 0] : f32 from vector<1x1x1xf32>
    %273 = arith.addf %264, %272 : f32
    %cst_90 = arith.constant 5.120000e+02 : f32
    %274 = arith.divf %273, %cst_90 : f32
    %cst_91 = arith.constant 0.000000e+00 : f32
    %275 = arith.addf %cst_91, %274 : f32
    %c0_92 = arith.constant 0 : index
    %c0_93 = arith.constant 0 : index
    %276 = tpu.strided_load %arg4[%c0_92, %c0_93] {strides = array<i32: 2, 1>} : memref<16x16xf32, #tpu.memory_space<vmem>>, vector<8x16xf32>
    %277 = vector.extract_strided_slice %276 {offsets = [0, 2], sizes = [8, 14], strides = [1, 1]} : vector<8x16xf32> to vector<8x14xf32>
    %278 = vector.extract_strided_slice %276 {offsets = [0, 0], sizes = [8, 14], strides = [1, 1]} : vector<8x16xf32> to vector<8x14xf32>
    %279 = arith.subf %277, %278 : vector<8x14xf32>
    %280 = math.absf %279 : vector<8x14xf32>
    %281 = vector.broadcast %7 : vector<1x14xf32> to vector<8x14xf32>
    %282 = arith.mulf %280, %281 : vector<8x14xf32>
    %283 = vector.shape_cast %282 : vector<8x14xf32> to vector<1x8x14xf32>
    %cst_94 = arith.constant dense<0.000000e+00> : vector<1xf32>
    %284 = vector.multi_reduction <add>, %283, %cst_94 [1, 2] : vector<1x8x14xf32> to vector<1xf32>
    %285 = vector.shape_cast %284 : vector<1xf32> to vector<1x1x1xf32>
    %286 = vector.extract %285[0, 0, 0] : f32 from vector<1x1x1xf32>
    %cst_95 = arith.constant 0.000000e+00 : f32
    %287 = arith.addf %cst_95, %286 : f32
    %c0_96 = arith.constant 0 : index
    %c0_97 = arith.constant 0 : index
    %288 = tpu.strided_load %arg4[%c0_96, %c0_97] {strides = array<i32: 2, 1>} : memref<16x16xf32, #tpu.memory_space<vmem>>, vector<7x16xf32>
    %c2_98 = arith.constant 2 : index
    %c0_99 = arith.constant 0 : index
    %289 = tpu.strided_load %arg4[%c2_98, %c0_99] {strides = array<i32: 2, 1>} : memref<16x16xf32, #tpu.memory_space<vmem>>, vector<7x16xf32>
    %290 = arith.subf %289, %288 : vector<7x16xf32>
    %291 = math.absf %290 : vector<7x16xf32>
    %292 = vector.broadcast %6 : vector<1x16xf32> to vector<7x16xf32>
    %293 = arith.mulf %291, %292 : vector<7x16xf32>
    %294 = vector.shape_cast %293 : vector<7x16xf32> to vector<1x7x16xf32>
    %cst_100 = arith.constant dense<0.000000e+00> : vector<1xf32>
    %295 = vector.multi_reduction <add>, %294, %cst_100 [1, 2] : vector<1x7x16xf32> to vector<1xf32>
    %296 = vector.shape_cast %295 : vector<1xf32> to vector<1x1x1xf32>
    %297 = vector.extract %296[0, 0, 0] : f32 from vector<1x1x1xf32>
    %298 = arith.addf %287, %297 : f32
    %cst_101 = arith.constant 1.280000e+02 : f32
    %299 = arith.divf %298, %cst_101 : f32
    %300 = arith.addf %275, %299 : f32
    %c0_102 = arith.constant 0 : index
    %c0_103 = arith.constant 0 : index
    %301 = tpu.strided_load %arg4[%c0_102, %c0_103] {strides = array<i32: 4, 1>} : memref<16x16xf32, #tpu.memory_space<vmem>>, vector<4x16xf32>
    %302 = vector.extract_strided_slice %301 {offsets = [0, 4], sizes = [4, 12], strides = [1, 1]} : vector<4x16xf32> to vector<4x12xf32>
    %303 = vector.extract_strided_slice %301 {offsets = [0, 0], sizes = [4, 12], strides = [1, 1]} : vector<4x16xf32> to vector<4x12xf32>
    %304 = arith.subf %302, %303 : vector<4x12xf32>
    %305 = math.absf %304 : vector<4x12xf32>
    %306 = vector.broadcast %14 : vector<1x12xf32> to vector<4x12xf32>
    %307 = arith.mulf %305, %306 : vector<4x12xf32>
    %308 = vector.shape_cast %307 : vector<4x12xf32> to vector<1x4x12xf32>
    %cst_104 = arith.constant dense<0.000000e+00> : vector<1xf32>
    %309 = vector.multi_reduction <add>, %308, %cst_104 [1, 2] : vector<1x4x12xf32> to vector<1xf32>
    %310 = vector.shape_cast %309 : vector<1xf32> to vector<1x1x1xf32>
    %311 = vector.extract %310[0, 0, 0] : f32 from vector<1x1x1xf32>
    %cst_105 = arith.constant 0.000000e+00 : f32
    %312 = arith.addf %cst_105, %311 : f32
    %c0_106 = arith.constant 0 : index
    %c0_107 = arith.constant 0 : index
    %313 = tpu.strided_load %arg4[%c0_106, %c0_107] {strides = array<i32: 4, 1>} : memref<16x16xf32, #tpu.memory_space<vmem>>, vector<3x16xf32>
    %c4_108 = arith.constant 4 : index
    %c0_109 = arith.constant 0 : index
    %314 = tpu.strided_load %arg4[%c4_108, %c0_109] {strides = array<i32: 4, 1>} : memref<16x16xf32, #tpu.memory_space<vmem>>, vector<3x16xf32>
    %315 = arith.subf %314, %313 : vector<3x16xf32>
    %316 = math.absf %315 : vector<3x16xf32>
    %317 = vector.broadcast %13 : vector<1x16xf32> to vector<3x16xf32>
    %318 = arith.mulf %316, %317 : vector<3x16xf32>
    %319 = vector.shape_cast %318 : vector<3x16xf32> to vector<1x3x16xf32>
    %cst_110 = arith.constant dense<0.000000e+00> : vector<1xf32>
    %320 = vector.multi_reduction <add>, %319, %cst_110 [1, 2] : vector<1x3x16xf32> to vector<1xf32>
    %321 = vector.shape_cast %320 : vector<1xf32> to vector<1x1x1xf32>
    %322 = vector.extract %321[0, 0, 0] : f32 from vector<1x1x1xf32>
    %323 = arith.addf %312, %322 : f32
    %cst_111 = arith.constant 3.200000e+01 : f32
    %324 = arith.divf %323, %cst_111 : f32
    %325 = arith.addf %300, %324 : f32
    %c0_112 = arith.constant 0 : index
    %c0_113 = arith.constant 0 : index
    %326 = tpu.strided_load %arg4[%c0_112, %c0_113] {strides = array<i32: 8, 1>} : memref<16x16xf32, #tpu.memory_space<vmem>>, vector<2x16xf32>
    %327 = vector.extract_strided_slice %326 {offsets = [0, 8], sizes = [2, 8], strides = [1, 1]} : vector<2x16xf32> to vector<2x8xf32>
    %328 = vector.extract_strided_slice %326 {offsets = [0, 0], sizes = [2, 8], strides = [1, 1]} : vector<2x16xf32> to vector<2x8xf32>
    %329 = arith.subf %327, %328 : vector<2x8xf32>
    %330 = math.absf %329 : vector<2x8xf32>
    %331 = vector.broadcast %21 : vector<1x8xf32> to vector<2x8xf32>
    %332 = arith.mulf %330, %331 : vector<2x8xf32>
    %333 = vector.shape_cast %332 : vector<2x8xf32> to vector<1x2x8xf32>
    %cst_114 = arith.constant dense<0.000000e+00> : vector<1xf32>
    %334 = vector.multi_reduction <add>, %333, %cst_114 [1, 2] : vector<1x2x8xf32> to vector<1xf32>
    %335 = vector.shape_cast %334 : vector<1xf32> to vector<1x1x1xf32>
    %336 = vector.extract %335[0, 0, 0] : f32 from vector<1x1x1xf32>
    %cst_115 = arith.constant 0.000000e+00 : f32
    %337 = arith.addf %cst_115, %336 : f32
    %c0_116 = arith.constant 0 : index
    %c0_117 = arith.constant 0 : index
    %338 = tpu.strided_load %arg4[%c0_116, %c0_117] {strides = array<i32: 8, 1>} : memref<16x16xf32, #tpu.memory_space<vmem>>, vector<1x16xf32>
    %c8_118 = arith.constant 8 : index
    %c0_119 = arith.constant 0 : index
    %339 = tpu.strided_load %arg4[%c8_118, %c0_119] {strides = array<i32: 8, 1>} : memref<16x16xf32, #tpu.memory_space<vmem>>, vector<1x16xf32>
    %340 = arith.subf %339, %338 : vector<1x16xf32>
    %341 = math.absf %340 : vector<1x16xf32>
    %342 = arith.mulf %341, %20 : vector<1x16xf32>
    %343 = vector.shape_cast %342 : vector<1x16xf32> to vector<1x1x16xf32>
    %cst_120 = arith.constant dense<0.000000e+00> : vector<1xf32>
    %344 = vector.multi_reduction <add>, %343, %cst_120 [1, 2] : vector<1x1x16xf32> to vector<1xf32>
    %345 = vector.shape_cast %344 : vector<1xf32> to vector<1x1x1xf32>
    %346 = vector.extract %345[0, 0, 0] : f32 from vector<1x1x1xf32>
    %347 = arith.addf %337, %346 : f32
    %cst_121 = arith.constant 8.000000e+00 : f32
    %348 = arith.divf %347, %cst_121 : f32
    %349 = arith.addf %325, %348 : f32
    %cst_122 = arith.constant 5.000000e-01 : f32
    %350 = arith.mulf %cst_122, %349 : f32
    %351 = arith.addf %249, %350 : f32
    %cst_123 = arith.constant 0.000000e+00 : f32
    %352 = vector.broadcast %cst_123 : f32 to vector<1x128xf32>
    %353 = vector.broadcast %351 : f32 to vector<1x128xf32>
    %354 = arith.addf %352, %353 : vector<1x128xf32>
    %c0_124 = arith.constant 0 : index
    %c0_125 = arith.constant 0 : index
    %355 = vector.load %arg3[%c0_124, %c0_125] : memref<1x128xf32, #tpu.memory_space<vmem>>, vector<1x128xf32>
    tpu.vector_store %arg3[%c0_124, %c0_125], %354 {strides = array<i32>} : memref<1x128xf32, #tpu.memory_space<vmem>>, vector<1x128xf32>,
    return
  }
  func.func @transform_0(%arg0: i32) -> (i32, i32, i32) {
    %c0_i32 = arith.constant 0 : i32
    %c0_i32_0 = arith.constant 0 : i32
    %c0_i32_1 = arith.constant 0 : i32
    return %arg0, %c0_i32, %c0_i32_0 : i32, i32, i32
  }
  func.func @transform_1(%arg0: i32) -> (i32, i32, i32) {
    %c0_i32 = arith.constant 0 : i32
    %c0_i32_0 = arith.constant 0 : i32
    %c0_i32_1 = arith.constant 0 : i32
    return %arg0, %c0_i32, %c0_i32_0 : i32, i32, i32
  }
  func.func @transform_2(%arg0: i32) -> (i32, i32) {
    %c0_i32 = arith.constant 0 : i32
    %c0_i32_0 = arith.constant 0 : i32
    return %arg0, %c0_i32 : i32, i32
  }
}

</mosaic_0001>

<bundles_post_ra>
// kernel: tpu_custom_call.1
= control target key start
LH: loop header
LB: loop body
LE: loop exit
PB: predicated region body
PF: predicated region fallthrough
CT: control target
= control target key end

     0   :  { %7 = vsyncpa [#allocation4], 0  ;;  %s1396_s0 = inlined_call_operand.hbm [shape: f32[2,16,16], index: 0, kind: input, shape index: {}]   ;;  %s1397_s1 = inlined_call_operand.hbm [shape: f32[2,16,16], index: 1, kind: input, shape index: {}]   ;;  %s1398_s2 = inlined_call_operand.hbm [shape: f32[1,128], index: 2, kind: output, shape index: {}]  }
   0x1   :  { %8 = vsyncpa [#allocation7], 0 }
   0x2   :  { %9 = vsyncpa [#allocation5], 0  ;;  %s14_s11 = sshll.u32 %s1396_s0, 4  ;;  %s1058_s12 = smov [#allocation3]   ;;  %s15_s11 = int_to_ptr.hbm [resolvable:$true] %s14_s11 }
   0x3   :  { %s16_s13 = sshll.u32 %s1058_s12, 4  ;;  %s27_s16 = sshll.u32 %s1397_s1, 4  ;;  %s17_s13 = int_to_ptr.vmem [resolvable:$true] %s16_s13  ;;  %s28_s16 = int_to_ptr.hbm [resolvable:$true] %s27_s16 }
   0x4   :  { %s1059_s17 = smov 128   ;;  %s1060_s18 = smov 8  }
   0x5   :  { %22 = dma.hbm_to_vmem [thread:$0]  %s15_s11, 512, %s17_s13, [#allocation4], %s1059_s17, %s1059_s17, %s1060_s18  }
   0x6   :  { %s1061_s19 = smov [#allocation6]  }
   0x7   :  { %s29_s20 = sshll.u32 %s1061_s19, 4  ;;  %s30_s20 = int_to_ptr.vmem [resolvable:$true] %s29_s20 }
   0x8   :  { %35 = dma.hbm_to_vmem [thread:$0]  %s28_s16, 512, %s30_s20, [#allocation7], %s1059_s17, %s1059_s17, %s1060_s18  }
   0x9   :  { %1052 = dma.done.wait [#allocation4], 512  }
   0xa   :  { %1053 = vsyncadd [#allocation4], 4294966784 }
   0xb   :  { %1054 = dma.done.wait [#allocation7], 512  }
   0xc   :  { %1055 = vsyncadd [#allocation7], 4294966784  ;;  %v1100_v0 = vld [vmem:[#allocation3] sm:$0xff]  ;;  %v1102_v1 = vld [vmem:[#allocation3 + $0x8] sm:$0xff]  ;;  %vm64_vm0 = vcmask 130048   ;;  %v1062_v60 = vmov 256.0  }
   0xd   :  { %v1104_v2 = vld [vmem:[#allocation6] sm:$0xff]  ;;  %v1106_v3 = vld [vmem:[#allocation6 + $0x8] sm:$0xff]  ;;  %v62_v5 = vmul.f32 %v1100_v0, %v1100_v0  ;;  %v63_v6 = vmul.f32 %v1102_v1, %v1102_v1  ;;  %v77_v17 = vsel %vm64_vm0, %v1100_v0, 0.0  ;;  %v78_v18 = vsel %vm64_vm0, %v1102_v1, 0.0  ;;  %s1064_s17 = smov 1  }
   0xe   :  { %v89_v4 = vmul.f32 %v1104_v2, %v1100_v0  ;;  %v90_v7 = vmul.f32 %v1106_v3, %v1102_v1  ;;  %v115_v13 = vmul.f32 %v1104_v2, %v1104_v2  ;;  %v116_v15 = vmul.f32 %v1106_v3, %v1106_v3 }
   0xf   :  { %v65_v9 = vsel %vm64_vm0, %v62_v5, 0.0  ;;  %v66_v10 = vsel %vm64_vm0, %v63_v6, 0.0  ;;  %v103_v20 = vsel %vm64_vm0, %v1104_v2, 0.0  ;;  %v104_v21 = vsel %vm64_vm0, %v1106_v3, 0.0 }
  0x10   :  { %v91_v8 = vsel %vm64_vm0, %v89_v4, 0.0  ;;  %v92_v11 = vsel %vm64_vm0, %v90_v7, 0.0  ;;  %v67_v12 = vadd.f32 %v66_v10, %v65_v9  ;;  %v117_v16 = vsel %vm64_vm0, %v115_v13, 0.0 }
  0x11   :  { %v93_v14 = vadd.f32 %v92_v11, %v91_v8  ;;  %v118_v19 = vsel %vm64_vm0, %v116_v15, 0.0  ;;  %v79_v23 = vadd.f32 %v78_v18, %v77_v17  ;;  %v105_v24 = vadd.f32 %v104_v21, %v103_v20 }
  0x12   :  { %68 = vadd.xlane.f32.xlu0 %v67_v12  ;;  %v119_v22 = vadd.f32 %v118_v19, %v117_v16  ;;  %964 = vrcp.f32 %v1062_v60  ;;  %v1063_v61 = vmov 2.0   ;;  %vm256_vm10 = vcmask 1040384  }
  0x13   :  { %94 = vadd.xlane.f32.xlu1 %v93_v14  ;;  %966 = vrcp.f32 %v1063_v61  ;;  %vm268_vm11 = vcmask 1046528   ;;  %vm275_vm12 = vcmask 129024   ;;  %vm387_vm13 = vcmask 124928  }
  0x14   :  { %120 = vadd.xlane.f32.xlu2 %v119_v22  ;;  %vm369_vm14 = vcmask 93184   ;;  %vm242_vm15 = vcmask 121856  }
  0x18   :  { %v965_v62 = vpop.eup %964 }
  0x19   :  { %v967_v63 = vpop.eup %966  ;;  %v193_v5 = vmul.f32 256.0, %v965_v62  ;;  %vm197_vm2 = vweird.f32 %v965_v62 }
  0x1a   :  { %80 = vadd.xlane.f32.xlu0 %v79_v23  ;;  %v203_v6 = vmul.f32 2.0, %v967_v63  ;;  %vm207_vm4 = vweird.f32 %v967_v63 }
  0x1b   :  { %106 = vadd.xlane.f32.xlu1 %v105_v24  ;;  %v194_v7 = vsub.f32 1.0, %v193_v5 }
  0x1c   :  { %v204_v8 = vsub.f32 1.0, %v203_v6 }
  0x1d   :  { %v195_v11 = vmul.f32 %v965_v62, %v194_v7 }
  0x1e   :  { %v205_v12 = vmul.f32 %v967_v63, %v204_v8 }
  0x1f   :  { %v196_v17 = vadd.f32 %v965_v62, %v195_v11 }
  0x20   :  { %v206_v18 = vadd.f32 %v967_v63, %v205_v12 }
  0x21   :  { %v198_v22 = vsel %vm197_vm2, %v965_v62, %v196_v17  ;;  %vm314_vm2 = vcmask 113664  }
  0x22   :  { %v208_v24 = vsel %vm207_vm4, %v967_v63, %v206_v18 }
  0x85   :  { %v69_v25 = vpop.xlane.xlu0 %68 }
  0x86   :  { %v95_v26 = vpop.xlane.xlu1 %94  ;;  %v70_v27 = vrot.slane %v69_v25, 4 }
  0x87   :  { %v96_v28 = vrot.slane %v95_v26, 4  ;;  %v121_v53 = vpop.xlane.xlu2 %120 }
  0x88   :  { %v71_v29 = vadd.f32 %v70_v27, %v69_v25  ;;  %v122_v54 = vrot.slane %v121_v53, 4 }
  0x89   :  { %v97_v30 = vadd.f32 %v96_v28, %v95_v26 }
  0x8a   :  { %v72_v31 = vrot.slane %v71_v29, 2  ;;  %v123_v55 = vadd.f32 %v122_v54, %v121_v53 }
  0x8b   :  { %v98_v32 = vrot.slane %v97_v30, 2 }
  0x8c   :  { %v73_v33 = vadd.f32 %v72_v31, %v71_v29  ;;  %v124_v56 = vrot.slane %v123_v55, 2 }
  0x8d   :  { %v81_v34 = vpop.xlane.xlu0 %80  ;;  %v99_v39 = vadd.f32 %v98_v32, %v97_v30 }
  0x8e   :  { %v107_v35 = vpop.xlane.xlu1 %106  ;;  %v82_v36 = vrot.slane %v81_v34, 4  ;;  %v74_v37 = vrot.slane %v73_v33, 1  ;;  %v125_v57 = vadd.f32 %v124_v56, %v123_v55 }
  0x8f   :  { %v108_v38 = vrot.slane %v107_v35, 4  ;;  %v100_v45 = vrot.slane %v99_v39, 1 }
  0x90   :  { %v83_v40 = vadd.f32 %v82_v36, %v81_v34  ;;  %v75_v41 = vadd.f32 %v74_v37, %v73_v33  ;;  %v126_v58 = vrot.slane %v125_v57, 1  ;;  %v1067_v37 = vmov 0.0  }
  0x91   :  { %v109_v42 = vadd.f32 %v108_v38, %v107_v35  ;;  %v101_v49 = vadd.f32 %v100_v45, %v99_v39 }
  0x92   :  { %v84_v43 = vrot.slane %v83_v40, 2  ;;  %877 = vpush %v75_v41  ;;  %v127_v59 = vadd.f32 %v126_v58, %v125_v57 }
  0x93   :  { %v110_v44 = vrot.slane %v109_v42, 2 }
  0x94   :  { %v85_v46 = vadd.f32 %v84_v43, %v83_v40 }
  0x95   :  { %v111_v47 = vadd.f32 %v110_v44, %v109_v42 }
  0x96   :  { %v86_v48 = vrot.slane %v85_v46, 1 }
  0x97   :  { %v112_v50 = vrot.slane %v111_v47, 1 }
  0x98   :  { %v87_v51 = vadd.f32 %v86_v48, %v85_v46 }
  0x99   :  { %v113_v52 = vadd.f32 %v112_v50, %v111_v47 }
  0x9a   :  { %879 = vpush %v87_v51 }
  0x9b   :  { %881 = vpush %v101_v49 }
  0x9c   :  { %883 = vpush %v113_v52 }
  0x9d   :  { %885 = vpush %v127_v59 }
  0xc3   :  { %s1134_s0 = spop %877 }
  0xc4   :  { %s129_s1 = smul.f32 256.0, %s1134_s0 }
  0xcb   :  { %s1137_s21 = spop %879 }
  0xcc   :  { %s130_s22 = smul.f32 %s1137_s21, %s1137_s21  ;;  %s1147_s25 = spop %881 }
  0xcd   :  { %s155_s26 = ssub.f32 0.0, %s1137_s21  ;;  %s1150_s27 = spop %883 }
  0xce   :  { %s1141_s23 = ssub.f32 %s129_s1, %s130_s22  ;;  %s134_s28 = smul.f32 256.0, %s1147_s25 }
  0xcf   :  { %s135_s29 = smul.f32 %s1150_s27, %s1137_s21  ;;  %s886_s4 = spop %885 }
  0xd0   :  { %p132_p0 = scmp.ne.f32.partialorder %s1141_s23, 0.0  ;;  %s156_s30 = smul.f32 %s1147_s25, %s155_s26 }
  0xd1   :  { %s157_s3 = smul.f32 %s1150_s27, %s1134_s0  ;;  %s136_s5 = ssub.f32 %s134_s28, %s135_s29 }
  0xd2   :  { %s133_s24 = scalar_select %p132_p0, %s1141_s23, 1.0 }
  0xd3   :  { %s158_s7 = sadd.f32 %s157_s3, %s156_s30  ;;  %s1065_s28 = smov 4  }
  0xd4   :  { %v137_v4 = vstv %s133_s24  ;;  %s1066_s29 = smov 2   ;;  %s1401_s30 = smov 124  }
  0xd5   :  { %968 = vrcp.f32 %v137_v4  ;;  %v149_v14 = vand.u32 2147483648, %v137_v4  ;;  %v147_v16 = vand.u32 2147483647, %v137_v4  ;;  %vm143_vm3 = vweird.f32 %v137_v4 }
  0xd7   :  { %v150_v20 = vor.u32 1.1754944e-38, %v149_v14  ;;  %vm148_vm6 = vcmp.eq.f32.partialorder %v147_v16, 8.507059e+37 }
  0xdb   :  { %v969_v9 = vpop.eup %968 }
  0xdc   :  { %v139_v10 = vmul.f32 %v969_v9, %v137_v4  ;;  %vm144_vm1 = vweird.f32 %v969_v9 }
  0xdd   :  { %vm145_vm5 = vmor %vm143_vm3, %vm144_vm1  ;;  %vm443_vm1 = vcmask 122880   ;;  %vm425_vm3 = vcmask 58368  }
  0xde   :  { %v140_v13 = vsub.f32 1.0, %v139_v10 }
  0xe0   :  { %v141_v15 = vmul.f32 %v969_v9, %v140_v13 }
  0xe2   :  { %v142_v19 = vadd.f32 %v969_v9, %v141_v15 }
  0xe4   :  { %v146_v21 = vsel %vm145_vm5, %v969_v9, %v142_v19 }
  0xe5   :  { %v151_v23 = vsel %vm148_vm6, %v150_v20, %v146_v21 }
  0xe6   :  { %887 = vpush %v151_v23 }
  0xe7   :  { %889 = vpush %v198_v22 }
  0xe8   :  { %891 = vpush %v208_v24 }
 0x117   :  { %s888_s6 = spop %887 }
 0x118   :  { %s153_s8 = smul.f32 %s888_s6, %s136_s5  ;;  %s1296_s3 = spop %889 }
 0x119   :  { %s175_s9 = smul.f32 %s888_s6, %s158_s7 }
 0x11a   :  { %s1409_s8 = smov (!%p132_p0, %s153_s8), 0.0 }
 0x11b   :  { %s1411_s9 = smov (!%p132_p0, %s175_s9), 0.0  ;;  %s177_s10 = smul.f32 %s1409_s8, %s1409_s8  ;;  %v212_v25 = vstv %s1409_s8 }
 0x11c   :  { %s179_s11 = smul.f32 %s1411_s9, %s1411_s9  ;;  %v213_v26 = vmul.f32 %v212_v25, %v1100_v0  ;;  %v214_v27 = vmul.f32 %v212_v25, %v1102_v1  ;;  %v215_v28 = vstv %s1411_s9  ;;  %v44_v0 = vlaneseq }
 0x11d   :  { %s178_s12 = smul.f32 %s1134_s0, %s177_s10 }
 0x11e   :  { %s180_s13 = smul.f32 256.0, %s179_s11  ;;  %v216_v29 = vadd.f32 %v215_v28, %v213_v26  ;;  %v217_v30 = vadd.f32 %v215_v28, %v214_v27  ;;  %v45_v1 = vand.u32 127, %v44_v0 }
 0x11f   :  { %s183_s14 = smul.f32 2.0, %s1409_s8 }
 0x120   :  { %v1171_v31 = vsub.f32 %v217_v30, %v1106_v3  ;;  %v1174_v32 = vsub.f32 %v216_v29, %v1104_v2  ;;  %s181_s15 = sadd.f32 %s180_s13, %s178_s12  ;;  %s189_s20 = smul.f32 2.0, %s1411_s9  ;;  %v54_v34 = vand.u32 7, %v45_v1  ;;  %v46_v35 = vand.u32 1, %v45_v1 }
 0x121   :  { %s184_s16 = smul.f32 %s183_s14, %s1411_s9  ;;  %v50_v36 = vand.u32 3, %v45_v1  ;;  %v1235_v1 = vld [vmem:[#allocation6 + $0x10] sm:$0xff] }
 0x122   :  { %226 = vrot.lane.b32.xlu0 %v1171_v31, %s1064_s17  ;;  %221 = vst.msk [vmem:[#allocation2 + $0x8] sm:$0xff] %vm64_vm0, %v1171_v31  ;;  %224 = vrot.lane.b32.xlu2 %v1174_v32, %s1064_s17  ;;  %s182_s19 = sadd.f32 %s886_s4, %s181_s15  ;;  %s187_s22 = smul.f32 %s1147_s25, %s183_s14  ;;  %vm55_vm7 = vcmp.eq.s32.totalorder %v54_v34, 0  ;;  %vm47_vm8 = vcmp.eq.s32.totalorder %v46_v35, 0  ;;  %v257_v62 = vrot.slane %v1174_v32, 7  ;;  %v258_v63 = vrot.slane %v1171_v31, 7  ;;  %v1242_v34 = vld [vmem:[#allocation3 + $0x18] sm:$0xff] }
 0x123   :  { %220 = vst.msk [vmem:[#allocation2] sm:$0xff] %vm64_vm0, %v1174_v32  ;;  %s185_s0 = smul.f32 %s1137_s21, %s184_s16  ;;  %vm51_vm9 = vcmp.eq.s32.totalorder %v50_v36, 0  ;;  %v1194_v38 = vsel %vm55_vm7, 1.0, %v1067_v37  ;;  %v1196_v39 = vsel %vm47_vm8, 1.0, %v1067_v37  ;;  %s1402_s21 = smov 127  }
 0x124   :  { %s190_s24 = smul.f32 %s1150_s27, %s189_s20  ;;  %v1200_v40 = vsel %vm51_vm9, 1.0, %v1067_v37  ;;  %s1400_s25 = smov 126   ;;  %v259_v4 = vsel %vm256_vm10, %v257_v62, %v258_v63  ;;  %v262_v5 = vsub.f32 %v1174_v32, %v257_v62  ;;  %v513_v63 = vsel %vm64_vm0, %v1235_v1, 0.0 }
 0x125   :  { %s186_s1 = sadd.f32 %s185_s0, %s182_s19  ;;  %s1399_s27 = smov 120   ;;  %v263_v6 = vsub.f32 %v1171_v31, %v259_v4 }
 0x126   :  { %v264_v9 = vand.u32 2147483647, %v262_v5  ;;  %s1298_s4 = spop %891 }
 0x127   :  { %s188_s23 = ssub.f32 %s186_s1, %s187_s22  ;;  %v265_v10 = vand.u32 2147483647, %v263_v6  ;;  %v525_v6 = vmul.f32 %v1235_v1, %v1235_v1 }
 0x128   :  { %v269_v16 = vrot.slane %v264_v9, 1 }
 0x129   :  { %s1189_s26 = ssub.f32 %s188_s23, %s190_s24  ;;  %v270_v17 = vrot.slane %v265_v10, 1  ;;  %v439_v29 = vld [vmem:[#allocation2 + $0x8] ss:$8 sm:$0x1] }
 0x12a   :  { %v409_v2 = vld [vmem:[#allocation2] ss:$8 sm:$0x3] }
 0x12b   :  { %v353_v3 = vld [vmem:[#allocation2] ss:$4 sm:$0xf]  ;;  %411 = vrot.lane.b32.xlu0 %v409_v2, %s1060_s18  ;;  %v271_v20 = vsel %vm268_vm11, %v269_v16, %v270_v17  ;;  %v276_v22 = vsel %vm275_vm12, %v270_v17, 0.0  ;;  %s200_s8 = smul.f32 %s1296_s3, %s1189_s26 }
 0x12c   :  { %355 = vrot.lane.b32.xlu2 %v353_v3, %s1065_s28  ;;  %v298_v33 = vld [vmem:[#allocation2] ss:$2 sm:$0xff]  ;;  %v274_v21 = vsel %vm64_vm0, %v271_v20, 0.0 }
 0x12d   :  { %300 = vrot.lane.b32.xlu1 %v298_v33, %s1066_s29  ;;  %v326_v7 = vld [vmem:[#allocation2] ss:$2 sm:$0x7f]  ;;  %v277_v25 = vadd.f32 %v276_v22, %v274_v21  ;;  %s201_s11 = smul.f32 0.5, %s200_s8 }
 0x12e   :  { %v328_v8 = vld [vmem:[#allocation2 + $0x2] ss:$2 sm:$0x7f]  ;;  %v437_v28 = vld [vmem:[#allocation2] ss:$8 sm:$0x1] }
 0x12f   :  { %v329_v11 = vsub.f32 %v328_v8, %v326_v7  ;;  %v381_v12 = vld [vmem:[#allocation2] ss:$4 sm:$0x7]  ;;  %v440_v30 = vsub.f32 %v439_v29, %v437_v28  ;;  %v527_v8 = vsel %vm64_vm0, %v525_v6, 0.0 }
 0x130   :  { %v383_v13 = vld [vmem:[#allocation2 + $0x4] ss:$4 sm:$0x7] }
 0x131   :  { %v384_v14 = vsub.f32 %v383_v13, %v381_v12  ;;  %v330_v15 = vand.u32 2147483647, %v329_v11  ;;  %v441_v0 = vand.u32 2147483647, %v440_v30  ;;  %v1072_v12 = vmov 512.0  }
 0x132   :  { %970 = vrcp.f32 %v1072_v12 }
 0x133   :  { %417 = vrot.lane.b32.xlu0 %v1194_v38, %s1060_s18  ;;  %v385_v18 = vand.u32 2147483647, %v384_v14  ;;  %v331_v19 = vmul.f32 %v1196_v39, %v330_v15 }
 0x134   :  { %306 = vrot.lane.b32.xlu2 %v1196_v39, %s1066_s29 }
 0x135   :  { %361 = vrot.lane.b32.xlu1 %v1200_v40, %s1065_s28  ;;  %v386_v23 = vmul.f32 %v1200_v40, %v385_v18  ;;  %v332_v24 = vsel %vm275_vm12, %v331_v19, 0.0  ;;  %v1073_v19 = vmov 128.0  }
 0x136   :  { %972 = vrcp.f32 %v1073_v19 }
 0x137   :  { %v388_v26 = vsel %vm387_vm13, %v386_v23, 0.0 }
 0x138   :  { %v971_v16 = vpop.eup %970 }
 0x139   :  { %v289_v18 = vmul.f32 512.0, %v971_v16  ;;  %vm293_vm4 = vweird.f32 %v971_v16 }
 0x13c   :  { %v1275_v29 = vpop.eup %972 }
 0x13d   :  { %vm348_vm5 = vweird.f32 %v1275_v29 }
 0x17c   :  { %v225_v41 = vpop.permute.xlu2 %224 }
 0x17d   :  { %v230_v42 = vsub.f32 %v1174_v32, %v225_v41 }
 0x17f   :  { %v232_v43 = vand.u32 2147483647, %v230_v42 }
 0x181   :  { %236 = vrot.lane.b32.xlu2 %v232_v43, %s1402_s21 }
 0x186   :  { %v356_v47 = vpop.permute.xlu2 %355 }
 0x187   :  { %v358_v53 = vsub.f32 %v353_v3, %v356_v47  ;;  %v442_v3 = vmul.f32 %v1194_v38, %v441_v0 }
 0x189   :  { %v359_v57 = vand.u32 2147483647, %v358_v53  ;;  %v444_v42 = vsel %vm443_vm1, %v442_v3, 0.0 }
 0x18e   :  { %v1210_v52 = vpop.permute.xlu2 %306 }
 0x194   :  { %v227_v44 = vpop.permute.xlu0 %226 }
 0x195   :  { %v231_v45 = vsub.f32 %v1171_v31, %v227_v44 }
 0x197   :  { %v233_v46 = vand.u32 2147483647, %v231_v45 }
 0x199   :  { %238 = vrot.lane.b32.xlu1 %v233_v46, %s1402_s21 }
 0x19d   :  { %v412_v48 = vpop.permute.xlu0 %411 }
 0x19e   :  { %v414_v51 = vsub.f32 %v409_v2, %v412_v48  ;;  %v1237_v2 = vld [vmem:[#allocation6 + $0x18] sm:$0xff] }
 0x19f   :  { %v301_v49 = vpop.permute.xlu1 %300  ;;  %v500_v36 = vmul.f32 %v1237_v2, %v1242_v34  ;;  %v514_v4 = vsel %vm64_vm0, %v1237_v2, 0.0  ;;  %v526_v7 = vmul.f32 %v1237_v2, %v1237_v2 }
 0x1a0   :  { %v303_v50 = vsub.f32 %v298_v33, %v301_v49  ;;  %v415_v56 = vand.u32 2147483647, %v414_v51  ;;  %v1240_v33 = vld [vmem:[#allocation3 + $0x10] sm:$0xff]  ;;  %v474_v49 = vmul.f32 %v1242_v34, %v1242_v34  ;;  %v515_v5 = vadd.f32 %v514_v4, %v513_v63 }
 0x1a1   :  { %v499_v35 = vmul.f32 %v1235_v1, %v1240_v33  ;;  %v502_v46 = vsel %vm64_vm0, %v500_v36, 0.0  ;;  %v473_v48 = vmul.f32 %v1240_v33, %v1240_v33  ;;  %v528_v9 = vsel %vm64_vm0, %v526_v7, 0.0 }
 0x1a2   :  { %v304_v54 = vand.u32 2147483647, %v303_v50  ;;  %v529_v10 = vadd.f32 %v528_v9, %v527_v8 }
 0x1a3   :  { %v501_v45 = vsel %vm64_vm0, %v499_v35, 0.0 }
 0x1a4   :  { %v309_v55 = vmul.f32 %v1210_v52, %v304_v54  ;;  %v503_v47 = vadd.f32 %v502_v46, %v501_v45  ;;  %v475_v54 = vsel %vm64_vm0, %v473_v48, 0.0 }
 0x1a5   :  { %v1214_v58 = vpop.permute.xlu0 %417 }
 0x1a6   :  { %311 = vrot.lane.b32.xlu0 %v309_v55, %s1400_s25  ;;  %v420_v59 = vmul.f32 %v1214_v58, %v415_v56  ;;  %v476_v55 = vsel %vm64_vm0, %v474_v49, 0.0 }
 0x1a7   :  { %v1217_v60 = vpop.permute.xlu1 %361 }
 0x1a8   :  { %v364_v61 = vmul.f32 %v1217_v60, %v359_v57  ;;  %422 = vrot.lane.b32.xlu1 %v420_v59, %s1399_s27  ;;  %v477_v57 = vadd.f32 %v476_v55, %v475_v54  ;;  %v487_v59 = vsel %vm64_vm0, %v1240_v33, 0.0 }
 0x1aa   :  { %366 = vrot.lane.b32.xlu2 %v364_v61, %s1401_s30  ;;  %v488_v61 = vsel %vm64_vm0, %v1242_v34, 0.0 }
 0x1ab   :  { %v489_v62 = vadd.f32 %v488_v61, %v487_v59 }
 0x1d0   :  { %333 = vadd.xlane.f32.xlu0 %v332_v24  ;;  %v290_v24 = vsub.f32 1.0, %v289_v18 }
 0x1d2   :  { %389 = vadd.xlane.f32.xlu1 %v388_v26  ;;  %v291_v3 = vmul.f32 %v971_v16, %v290_v24 }
 0x1d3   :  { %278 = vadd.xlane.f32.xlu2 %v277_v25  ;;  %v1074_v25 = vmov 32.0  }
 0x1d4   :  { %974 = vrcp.f32 %v1074_v25 }
 0x1db   :  { %v237_v27 = vpop.permute.xlu2 %236 }
 0x1dc   :  { %v243_v41 = vsel %vm242_vm15, %v237_v27, 0.0 }
 0x204   :  { %v367_v31 = vpop.permute.xlu2 %366 }
 0x205   :  { %v370_v32 = vsel %vm369_vm14, %v367_v31, 0.0 }
 0x206   :  { %371 = vadd.xlane.f32.xlu2 %v370_v32  ;;  %v1075_v32 = vmov 8.0  }
 0x207   :  { %976 = vrcp.f32 %v1075_v32 }
 0x20b   :  { %v239_v37 = vpop.permute.xlu1 %238 }
 0x20c   :  { %v244_v43 = vsel %vm242_vm15, %v239_v37, 0.0  ;;  %v1277_v37 = vpop.eup %974 }
 0x20d   :  { %v245_v44 = vadd.f32 %v244_v43, %v243_v41  ;;  %v1280_v49 = vpop.eup %976  ;;  %vm404_vm6 = vweird.f32 %v1277_v37 }
 0x20e   :  { %445 = vadd.xlane.f32.xlu2 %v444_v42  ;;  %v344_v42 = vmul.f32 128.0, %v1275_v29  ;;  %v456_v6 = vmul.f32 8.0, %v1280_v49  ;;  %vm460_vm7 = vweird.f32 %v1280_v49 }
 0x20f   :  { %246 = vadd.xlane.f32.xlu0 %v245_v44 }
 0x216   :  { %504 = vadd.xlane.f32.xlu2 %v503_v47  ;;  %v292_v47 = vadd.f32 %v971_v16, %v291_v3 }
 0x218   :  { %v312_v50 = vpop.permute.xlu0 %311 }
 0x219   :  { %v315_v51 = vsel %vm314_vm2, %v312_v50, 0.0 }
 0x21a   :  { %316 = vadd.xlane.f32.xlu1 %v315_v51  ;;  %v423_v53 = vpop.permute.xlu1 %422 }
 0x21b   :  { %v426_v56 = vsel %vm425_vm3, %v423_v53, 0.0  ;;  %v400_v53 = vmul.f32 32.0, %v1277_v37 }
 0x21c   :  { %427 = vadd.xlane.f32.xlu0 %v426_v56  ;;  %v345_v56 = vsub.f32 1.0, %v344_v42 }
 0x21e   :  { %v346_v12 = vmul.f32 %v1275_v29, %v345_v56 }
 0x220   :  { %v347_v25 = vadd.f32 %v1275_v29, %v346_v12 }
 0x222   :  { %478 = vadd.xlane.f32.xlu1 %v477_v57 }
 0x224   :  { %490 = vadd.xlane.f32.xlu0 %v489_v62 }
 0x22a   :  { %516 = vadd.xlane.f32.xlu1 %v515_v5  ;;  %v294_v5 = vsel %vm293_vm4, %v971_v16, %v292_v47 }
 0x22c   :  { %530 = vadd.xlane.f32.xlu0 %v529_v10  ;;  %v401_v10 = vsub.f32 1.0, %v400_v53 }
 0x243   :  { %v334_v15 = vpop.xlane.xlu0 %333 }
 0x244   :  { %v335_v26 = vrot.slane %v334_v15, 4 }
 0x245   :  { %v390_v21 = vpop.xlane.xlu1 %389 }
 0x246   :  { %v279_v11 = vpop.xlane.xlu2 %278  ;;  %v391_v28 = vrot.slane %v390_v21, 4  ;;  %v336_v35 = vadd.f32 %v335_v26, %v334_v15 }
 0x247   :  { %v280_v14 = vrot.slane %v279_v11, 4 }
 0x248   :  { %v392_v41 = vadd.f32 %v391_v28, %v390_v21  ;;  %v337_v50 = vrot.slane %v336_v35, 2 }
 0x249   :  { %v281_v17 = vadd.f32 %v280_v14, %v279_v11 }
 0x24a   :  { %v393_v54 = vrot.slane %v392_v41, 2  ;;  %v338_v9 = vadd.f32 %v337_v50, %v336_v35 }
 0x24b   :  { %v282_v20 = vrot.slane %v281_v17, 2 }
 0x24c   :  { %v339_v21 = vrot.slane %v338_v9, 1 }
 0x24d   :  { %v283_v31 = vadd.f32 %v282_v20, %v281_v17  ;;  %v457_v20 = vsub.f32 1.0, %v456_v6 }
 0x24e   :  { %v340_v42 = vadd.f32 %v339_v21, %v338_v9 }
 0x24f   :  { %v284_v44 = vrot.slane %v283_v31, 1  ;;  %v458_v3 = vmul.f32 %v1280_v49, %v457_v20 }
 0x251   :  { %v285_v61 = vadd.f32 %v284_v44, %v283_v31 }
 0x279   :  { %v372_v13 = vpop.xlane.xlu2 %371 }
 0x27a   :  { %v373_v0 = vrot.slane %v372_v13, 4 }
 0x27c   :  { %v374_v45 = vadd.f32 %v373_v0, %v372_v13  ;;  %v394_v13 = vadd.f32 %v393_v54, %v392_v41 }
 0x27e   :  { %v375_v63 = vrot.slane %v374_v45, 2  ;;  %v395_v26 = vrot.slane %v394_v13, 1 }
 0x280   :  { %v376_v19 = vadd.f32 %v375_v63, %v374_v45  ;;  %v349_v45 = vsel %vm348_vm5, %v1275_v29, %v347_v25 }
 0x281   :  { %v446_v22 = vpop.xlane.xlu2 %445 }
 0x282   :  { %v247_v23 = vpop.xlane.xlu0 %246  ;;  %v447_v46 = vrot.slane %v446_v22, 4  ;;  %v377_v31 = vrot.slane %v376_v19, 1 }
 0x283   :  { %v248_v27 = vrot.slane %v247_v23, 4 }
 0x284   :  { %v448_v4 = vadd.f32 %v447_v46, %v446_v22  ;;  %v402_v22 = vmul.f32 %v1277_v37, %v401_v10  ;;  %v378_v53 = vadd.f32 %v377_v31, %v376_v19 }
 0x285   :  { %v249_v30 = vadd.f32 %v248_v27, %v247_v23 }
 0x286   :  { %v449_v17 = vrot.slane %v448_v4, 2 }
 0x287   :  { %v250_v36 = vrot.slane %v249_v30, 2 }
 0x288   :  { %v450_v0 = vadd.f32 %v449_v17, %v448_v4 }
 0x289   :  { %v251_v43 = vadd.f32 %v250_v36, %v249_v30  ;;  %v505_v48 = vpop.xlane.xlu2 %504 }
 0x28a   :  { %v506_v62 = vrot.slane %v505_v48, 4  ;;  %v451_v54 = vrot.slane %v450_v0, 1 }
 0x28b   :  { %v252_v51 = vrot.slane %v251_v43, 1 }
 0x28c   :  { %v507_v15 = vadd.f32 %v506_v62, %v505_v48  ;;  %v396_v48 = vadd.f32 %v395_v26, %v394_v13 }
 0x28d   :  { %v317_v55 = vpop.xlane.xlu1 %316  ;;  %v253_v59 = vadd.f32 %v252_v51, %v251_v43  ;;  %v403_v43 = vadd.f32 %v1277_v37, %v402_v22 }
 0x28e   :  { %v318_v57 = vrot.slane %v317_v55, 4  ;;  %v508_v30 = vrot.slane %v507_v15, 2 }
 0x28f   :  { %v428_v8 = vpop.xlane.xlu0 %427  ;;  %893 = vpush %v253_v59  ;;  %v405_v56 = vsel %vm404_vm6, %v1277_v37, %v403_v43 }
 0x290   :  { %v319_v7 = vadd.f32 %v318_v57, %v317_v55  ;;  %v429_v11 = vrot.slane %v428_v8, 4  ;;  %895 = vpush %v285_v61  ;;  %v509_v50 = vadd.f32 %v508_v30, %v507_v15  ;;  %v459_v55 = vadd.f32 %v1280_v49, %v458_v3 }
 0x291   :  { %897 = vpush %v294_v5  ;;  %v452_v5 = vadd.f32 %v451_v54, %v450_v0 }
 0x292   :  { %v320_v14 = vrot.slane %v319_v7, 2  ;;  %v430_v18 = vadd.f32 %v429_v11, %v428_v8  ;;  %v510_v4 = vrot.slane %v509_v50, 1  ;;  %v461_v6 = vsel %vm460_vm7, %v1280_v49, %v459_v55 }
 0x294   :  { %v321_v16 = vadd.f32 %v320_v14, %v319_v7  ;;  %v431_v23 = vrot.slane %v430_v18, 2  ;;  %v511_v11 = vadd.f32 %v510_v4, %v509_v50 }
 0x295   :  { %v479_v24 = vpop.xlane.xlu1 %478 }
 0x296   :  { %v480_v27 = vrot.slane %v479_v24, 4  ;;  %v322_v28 = vrot.slane %v321_v16, 1  ;;  %v432_v32 = vadd.f32 %v431_v23, %v430_v18 }
 0x297   :  { %v491_v36 = vpop.xlane.xlu0 %490 }
 0x298   :  { %v481_v35 = vadd.f32 %v480_v27, %v479_v24  ;;  %v323_v41 = vadd.f32 %v322_v28, %v321_v16  ;;  %v492_v44 = vrot.slane %v491_v36, 4  ;;  %v433_v46 = vrot.slane %v432_v32, 1 }
 0x29a   :  { %v482_v47 = vrot.slane %v481_v35, 2  ;;  %899 = vpush %v323_v41  ;;  %v493_v51 = vadd.f32 %v492_v44, %v491_v36  ;;  %v434_v57 = vadd.f32 %v433_v46, %v432_v32 }
 0x29b   :  { %901 = vpush %v340_v42 }
 0x29c   :  { %903 = vpush %v349_v45  ;;  %v483_v29 = vadd.f32 %v482_v47, %v481_v35  ;;  %v494_v59 = vrot.slane %v493_v51, 2 }
 0x29d   :  { %905 = vpush %v378_v53  ;;  %v517_v61 = vpop.xlane.xlu1 %516 }
 0x29e   :  { %907 = vpush %v396_v48  ;;  %v518_v62 = vrot.slane %v517_v61, 4  ;;  %v484_v63 = vrot.slane %v483_v29, 1  ;;  %v495_v7 = vadd.f32 %v494_v59, %v493_v51 }
 0x29f   :  { %909 = vpush %v405_v56  ;;  %v531_v49 = vpop.xlane.xlu0 %530 }
 0x2a0   :  { %v519_v8 = vadd.f32 %v518_v62, %v517_v61  ;;  %911 = vpush %v434_v57  ;;  %v485_v9 = vadd.f32 %v484_v63, %v483_v29  ;;  %v496_v37 = vrot.slane %v495_v7, 1  ;;  %v532_v17 = vrot.slane %v531_v49, 4 }
 0x2a1   :  { %913 = vpush %v452_v5 }
 0x2a2   :  { %v520_v10 = vrot.slane %v519_v8, 2  ;;  %915 = vpush %v461_v6  ;;  %v497_v12 = vadd.f32 %v496_v37, %v495_v7  ;;  %v533_v18 = vadd.f32 %v532_v17, %v531_v49 }
 0x2a3   :  { %917 = vpush %v485_v9 }
 0x2a4   :  { %v521_v13 = vadd.f32 %v520_v10, %v519_v8  ;;  %919 = vpush %v497_v12  ;;  %v534_v19 = vrot.slane %v533_v18, 2 }
 0x2a5   :  { %921 = vpush %v511_v11 }
 0x2a6   :  { %v522_v14 = vrot.slane %v521_v13, 1  ;;  %v535_v20 = vadd.f32 %v534_v19, %v533_v18 }
 0x2a8   :  { %v523_v15 = vadd.f32 %v522_v14, %v521_v13  ;;  %v536_v16 = vrot.slane %v535_v20, 1 }
 0x2aa   :  { %923 = vpush %v523_v15  ;;  %v537_v21 = vadd.f32 %v536_v16, %v535_v20 }
 0x2ac   :  { %925 = vpush %v537_v21 }
 0x2c0   :  { %s894_s5 = spop %893 }
 0x2c1   :  { %s896_s6 = spop %895 }
 0x2c2   :  { %s287_s7 = sadd.f32 %s896_s6, %s894_s5  ;;  %s1302_s9 = spop %897 }
 0x2c4   :  { %s296_s15 = smul.f32 %s1302_s9, %s287_s7 }
 0x2cb   :  { %s900_s10 = spop %899 }
 0x2cc   :  { %s902_s12 = spop %901 }
 0x2cd   :  { %s342_s13 = sadd.f32 %s902_s12, %s900_s10  ;;  %s1304_s14 = spop %903 }
 0x2ce   :  { %s906_s16 = spop %905 }
 0x2cf   :  { %s351_s19 = smul.f32 %s1304_s14, %s342_s13  ;;  %s908_s20 = spop %907 }
 0x2d0   :  { %s398_s0 = sadd.f32 %s908_s20, %s906_s16  ;;  %s1308_s1 = spop %909 }
 0x2d1   :  { %s352_s22 = sadd.f32 %s351_s19, %s296_s15  ;;  %s912_s23 = spop %911 }
 0x2d2   :  { %s407_s24 = smul.f32 %s1308_s1, %s398_s0  ;;  %s914_s26 = spop %913 }
 0x2d3   :  { %s454_s5 = sadd.f32 %s914_s26, %s912_s23  ;;  %s1311_s6 = spop %915 }
 0x2d4   :  { %s408_s8 = sadd.f32 %s407_s24, %s352_s22  ;;  %s1313_s10 = spop %917 }
 0x2d5   :  { %s463_s7 = smul.f32 %s1311_s6, %s454_s5  ;;  %s1317_s13 = spop %919 }
 0x2d6   :  { %s539_s12 = smul.f32 256.0, %s1313_s10  ;;  %s565_s5 = ssub.f32 0.0, %s1317_s13 }
 0x2d7   :  { %s464_s16 = sadd.f32 %s463_s7, %s408_s8  ;;  %s540_s20 = smul.f32 %s1317_s13, %s1317_s13 }
 0x2d8   :  { %s210_s15 = smul.f32 %s1298_s4, %s201_s11  ;;  %s1330_s11 = spop %921 }
 0x2d9   :  { %s465_s19 = smul.f32 0.5, %s464_s16  ;;  %s1322_s0 = ssub.f32 %s539_s12, %s540_s20 }
 0x2da   :  { %s544_s26 = smul.f32 256.0, %s1330_s11 }
 0x2db   :  { %s1324_s23 = sadd.f32 %s465_s19, %s210_s15  ;;  %p542_p1 = scmp.ne.f32.partialorder %s1322_s0, 0.0 }
 0x2dc   :  { %s1332_s24 = spop %923  ;;  %s566_s12 = smul.f32 %s1330_s11, %s565_s5 }
 0x2dd   :  { %s543_s22 = scalar_select %p542_p1, %s1322_s0, 1.0 }
 0x2de   :  { %s545_s8 = smul.f32 %s1332_s24, %s1317_s13  ;;  %s926_s16 = spop %925 }
 0x2df   :  { %v547_v22 = vstv %s543_s22  ;;  %s567_s7 = smul.f32 %s1332_s24, %s1313_s10 }
 0x2e0   :  { %978 = vrcp.f32 %v547_v22  ;;  %v559_v26 = vand.u32 2147483648, %v547_v22  ;;  %v557_v28 = vand.u32 2147483647, %v547_v22  ;;  %vm553_vm9 = vweird.f32 %v547_v22  ;;  %s546_s20 = ssub.f32 %s544_s26, %s545_s8 }
 0x2e1   :  { %s568_s19 = sadd.f32 %s567_s7, %s566_s12 }
 0x2e2   :  { %v560_v31 = vor.u32 1.1754944e-38, %v559_v26  ;;  %vm558_vm5 = vcmp.eq.f32.partialorder %v557_v28, 8.507059e+37 }
 0x2e6   :  { %v979_v23 = vpop.eup %978 }
 0x2e7   :  { %v549_v24 = vmul.f32 %v979_v23, %v547_v22  ;;  %vm554_vm8 = vweird.f32 %v979_v23 }
 0x2e8   :  { %vm555_vm4 = vmor %vm553_vm9, %vm554_vm8 }
 0x2e9   :  { %v550_v25 = vsub.f32 1.0, %v549_v24 }
 0x2eb   :  { %v551_v27 = vmul.f32 %v979_v23, %v550_v25 }
 0x2ed   :  { %v552_v30 = vadd.f32 %v979_v23, %v551_v27 }
 0x2ef   :  { %v556_v32 = vsel %vm555_vm4, %v979_v23, %v552_v30 }
 0x2f0   :  { %v561_v0 = vsel %vm558_vm5, %v560_v31, %v556_v32 }
 0x2f1   :  { %927 = vpush %v561_v0 }
 0x322   :  { %s928_s15 = spop %927 }
 0x323   :  { %s563_s22 = smul.f32 %s928_s15, %s546_s20 }
 0x324   :  { %s585_s27 = smul.f32 %s928_s15, %s568_s19 }
 0x325   :  { %s1413_s22 = smov (!%p542_p1, %s563_s22), 0.0 }
 0x326   :  { %s1415_s27 = smov (!%p542_p1, %s585_s27), 0.0  ;;  %s587_s25 = smul.f32 %s1413_s22, %s1413_s22  ;;  %v622_v3 = vstv %s1413_s22 }
 0x327   :  { %s589_s30 = smul.f32 %s1415_s27, %s1415_s27  ;;  %v623_v35 = vmul.f32 %v622_v3, %v1240_v33  ;;  %v624_v36 = vmul.f32 %v622_v3, %v1242_v34  ;;  %v625_v41 = vstv %s1415_s27 }
 0x328   :  { %s588_s21 = smul.f32 %s1313_s10, %s587_s25 }
 0x329   :  { %s590_s5 = smul.f32 256.0, %s589_s30  ;;  %v626_v42 = vadd.f32 %v625_v41, %v623_v35  ;;  %v627_v43 = vadd.f32 %v625_v41, %v624_v36 }
 0x32a   :  { %s593_s26 = smul.f32 2.0, %s1413_s22 }
 0x32b   :  { %s591_s8 = sadd.f32 %s590_s5, %s588_s21  ;;  %v629_v44 = vsub.f32 %v627_v43, %v1237_v2  ;;  %v628_v45 = vsub.f32 %v626_v42, %v1235_v1  ;;  %s599_s12 = smul.f32 2.0, %s1415_s27 }
 0x32c   :  { %s594_s0 = smul.f32 %s593_s26, %s1415_s27 }
 0x32d   :  { %s592_s7 = sadd.f32 %s926_s16, %s591_s8  ;;  %636 = vrot.lane.b32.xlu1 %v629_v44, %s1064_s17  ;;  %631 = vst.msk [vmem:[#allocation2 + $0x8] sm:$0xff] %vm64_vm0, %v629_v44  ;;  %634 = vrot.lane.b32.xlu2 %v628_v45, %s1064_s17  ;;  %s597_s30 = smul.f32 %s1330_s11, %s593_s26  ;;  %v665_v57 = vrot.slane %v628_v45, 7  ;;  %v666_v29 = vrot.slane %v629_v44, 7 }
 0x32e   :  { %s595_s25 = smul.f32 %s1317_s13, %s594_s0  ;;  %630 = vst.msk [vmem:[#allocation2] sm:$0xff] %vm64_vm0, %v628_v45  ;;  %s1404_s13 = smov 127  }
 0x32f   :  { %s600_s20 = smul.f32 %s1332_s24, %s599_s12  ;;  %v667_v62 = vsel %vm256_vm10, %v665_v57, %v666_v29  ;;  %v670_v5 = vsub.f32 %v628_v45, %v665_v57 }
 0x330   :  { %s596_s21 = sadd.f32 %s595_s25, %s592_s7  ;;  %v671_v6 = vsub.f32 %v629_v44, %v667_v62 }
 0x331   :  { %v672_v8 = vand.u32 2147483647, %v670_v5 }
 0x332   :  { %s598_s10 = ssub.f32 %s596_s21, %s597_s30  ;;  %v673_v9 = vand.u32 2147483647, %v671_v6 }
 0x333   :  { %v676_v11 = vrot.slane %v672_v8, 1 }
 0x334   :  { %s601_s15 = ssub.f32 %s598_s10, %s600_s20  ;;  %v677_v12 = vrot.slane %v673_v9, 1  ;;  %v826_v26 = vld [vmem:[#allocation2 + $0x8] ss:$8 sm:$0x1] }
 0x335   :  { %v753_v1 = vld [vmem:[#allocation2] ss:$4 sm:$0xf] }
 0x336   :  { %v704_v2 = vld [vmem:[#allocation2] ss:$2 sm:$0xff]  ;;  %755 = vrot.lane.b32.xlu2 %v753_v1, %s1065_s28  ;;  %s610_s27 = smul.f32 %s1296_s3, %s601_s15  ;;  %s1405_s28 = smov 124   ;;  %v678_v13 = vsel %vm268_vm11, %v676_v11, %v677_v12 }
 0x337   :  { %706 = vrot.lane.b32.xlu0 %v704_v2, %s1066_s29  ;;  %v802_v33 = vld [vmem:[#allocation2] ss:$8 sm:$0x3]  ;;  %s1407_s29 = smov 120   ;;  %v681_v14 = vsel %vm64_vm0, %v678_v13, 0.0 }
 0x338   :  { %s611_s16 = smul.f32 0.5, %s610_s27  ;;  %v727_v49 = vld [vmem:[#allocation2] ss:$2 sm:$0x7f] }
 0x339   :  { %v728_v17 = vld [vmem:[#allocation2 + $0x2] ss:$2 sm:$0x7f]  ;;  %v825_v25 = vld [vmem:[#allocation2] ss:$8 sm:$0x1] }
 0x33a   :  { %s620_s19 = smul.f32 %s1298_s4, %s611_s16  ;;  %v729_v18 = vsub.f32 %v728_v17, %v727_v49  ;;  %v827_v27 = vsub.f32 %v826_v26, %v825_v25  ;;  %v776_v35 = vld [vmem:[#allocation2] ss:$4 sm:$0x7] }
 0x33b   :  { %v777_v36 = vld [vmem:[#allocation2 + $0x4] ss:$4 sm:$0x7] }
 0x33c   :  { %s1363_s17 = sadd.f32 %s620_s19, %s1324_s23  ;;  %v730_v19 = vand.u32 2147483647, %v729_v18  ;;  %v828_v31 = vand.u32 2147483647, %v827_v27  ;;  %v778_v41 = vsub.f32 %v777_v36, %v776_v35 }
 0x33e   :  { %v731_v20 = vmul.f32 %v1196_v39, %v730_v19  ;;  %v829_v39 = vmul.f32 %v1194_v38, %v828_v31 }
 0x33f   :  { %804 = vrot.lane.b32.xlu0 %v802_v33, %s1060_s18  ;;  %s1406_s18 = smov 126  }
 0x340   :  { %v830_v0 = vsel %vm443_vm1, %v829_v39, 0.0 }
 0x387   :  { %v635_v34 = vpop.permute.xlu2 %634 }
 0x388   :  { %v640_v46 = vsub.f32 %v628_v45, %v635_v34 }
 0x38a   :  { %v642_v47 = vand.u32 2147483647, %v640_v46 }
 0x38c   :  { %646 = vrot.lane.b32.xlu1 %v642_v47, %s1404_s13 }
 0x390   :  { %v756_v48 = vpop.permute.xlu2 %755 }
 0x391   :  { %v758_v50 = vsub.f32 %v753_v1, %v756_v48 }
 0x393   :  { %v759_v51 = vand.u32 2147483647, %v758_v50 }
 0x395   :  { %v760_v53 = vmul.f32 %v759_v51, %v1217_v60 }
 0x397   :  { %762 = vrot.lane.b32.xlu1 %v760_v53, %s1405_s28 }
 0x39f   :  { %v637_v54 = vpop.permute.xlu1 %636 }
 0x3a0   :  { %v641_v55 = vsub.f32 %v629_v44, %v637_v54  ;;  %v779_v44 = vand.u32 2147483647, %v778_v41 }
 0x3a2   :  { %v643_v56 = vand.u32 2147483647, %v641_v55  ;;  %v780_v45 = vmul.f32 %v1200_v40, %v779_v44 }
 0x3a4   :  { %648 = vrot.lane.b32.xlu2 %v643_v56, %s1404_s13  ;;  %v781_v1 = vsel %vm387_vm13, %v780_v45, 0.0  ;;  %s863_s13 = sshll.u32 %s1398_s2, 4  ;;  %s864_s13 = int_to_ptr.hbm [resolvable:$true] %s863_s13 }
 0x3a9   :  { %v707_v59 = vpop.permute.xlu0 %706 }
 0x3aa   :  { %v709_v61 = vsub.f32 %v704_v2, %v707_v59 }
 0x3ac   :  { %v710_v63 = vand.u32 2147483647, %v709_v61 }
 0x3ae   :  { %v711_v4 = vmul.f32 %v710_v63, %v1210_v52  ;;  %v682_v52 = vsel %vm275_vm12, %v677_v12, 0.0 }
 0x3af   :  { %v683_v15 = vadd.f32 %v682_v52, %v681_v14 }
 0x3b0   :  { %713 = vrot.lane.b32.xlu0 %v711_v4, %s1406_s18  ;;  %s1076_s18 = smov [#allocation8]  }
 0x3b1   :  { %v805_v60 = vpop.permute.xlu0 %804 }
 0x3b2   :  { %v807_v7 = vsub.f32 %v802_v33, %v805_v60 }
 0x3b4   :  { %v808_v37 = vand.u32 2147483647, %v807_v7 }
 0x3b6   :  { %v809_v10 = vmul.f32 %v808_v37, %v1214_v58  ;;  %v732_v58 = vsel %vm275_vm12, %v731_v20, 0.0 }
 0x3b8   :  { %811 = vrot.lane.b32.xlu2 %v809_v10, %s1407_s29 }
 0x3c1   :  { %684 = vadd.xlane.f32.xlu1 %v683_v15 }
 0x3da   :  { %733 = vadd.xlane.f32.xlu0 %v732_v58 }
 0x3fe   :  { %v647_v16 = vpop.permute.xlu1 %646  ;;  %v649_v21 = vpop.permute.xlu2 %648 }
 0x3ff   :  { %v652_v22 = vsel %vm242_vm15, %v647_v16, 0.0  ;;  %v653_v23 = vsel %vm242_vm15, %v649_v21, 0.0 }
 0x400   :  { %v654_v24 = vadd.f32 %v653_v23, %v652_v22 }
 0x402   :  { %655 = vadd.xlane.f32.xlu0 %v654_v24 }
 0x409   :  { %v763_v28 = vpop.permute.xlu1 %762 }
 0x40a   :  { %v765_v30 = vsel %vm369_vm14, %v763_v28, 0.0 }
 0x40b   :  { %766 = vadd.xlane.f32.xlu1 %v765_v30 }
 0x412   :  { %v812_v32 = vpop.permute.xlu2 %811 }
 0x413   :  { %v814_v3 = vsel %vm425_vm3, %v812_v32, 0.0  ;;  %831 = vadd.xlane.f32.xlu1 %v830_v0 }
 0x414   :  { %815 = vadd.xlane.f32.xlu0 %v814_v3 }
 0x422   :  { %v714_v42 = vpop.permute.xlu0 %713 }
 0x423   :  { %v716_v43 = vsel %vm314_vm2, %v714_v42, 0.0 }
 0x424   :  { %717 = vadd.xlane.f32.xlu2 %v716_v43 }
 0x42c   :  { %782 = vadd.xlane.f32.xlu2 %v781_v1 }
 0x434   :  { %v685_v38 = vpop.xlane.xlu1 %684 }
 0x435   :  { %v686_v2 = vrot.slane %v685_v38, 4 }
 0x437   :  { %v687_v34 = vadd.f32 %v686_v2, %v685_v38 }
 0x439   :  { %v688_v46 = vrot.slane %v687_v34, 2 }
 0x43b   :  { %v689_v51 = vadd.f32 %v688_v46, %v687_v34 }
 0x43d   :  { %v690_v55 = vrot.slane %v689_v51, 1 }
 0x43f   :  { %v691_v29 = vadd.f32 %v690_v55, %v689_v51 }
 0x44d   :  { %v734_v33 = vpop.xlane.xlu0 %733 }
 0x44e   :  { %v735_v59 = vrot.slane %v734_v33, 4 }
 0x450   :  { %v736_v62 = vadd.f32 %v735_v59, %v734_v33 }
 0x452   :  { %v737_v6 = vrot.slane %v736_v62, 2 }
 0x454   :  { %v738_v12 = vadd.f32 %v737_v6, %v736_v62 }
 0x456   :  { %v739_v18 = vrot.slane %v738_v12, 1 }
 0x458   :  { %v740_v24 = vadd.f32 %v739_v18, %v738_v12 }
 0x475   :  { %v656_v47 = vpop.xlane.xlu0 %655 }
 0x476   :  { %v657_v48 = vrot.slane %v656_v47, 4 }
 0x478   :  { %v658_v50 = vadd.f32 %v657_v48, %v656_v47 }
 0x47a   :  { %v659_v53 = vrot.slane %v658_v50, 2 }
 0x47c   :  { %v660_v54 = vadd.f32 %v659_v53, %v658_v50 }
 0x47e   :  { %v661_v56 = vrot.slane %v660_v54, 1  ;;  %v767_v40 = vpop.xlane.xlu1 %766 }
 0x47f   :  { %v768_v61 = vrot.slane %v767_v40, 4 }
 0x480   :  { %v662_v57 = vadd.f32 %v661_v56, %v660_v54 }
 0x481   :  { %v769_v63 = vadd.f32 %v768_v61, %v767_v40 }
 0x482   :  { %929 = vpush %v662_v57 }
 0x483   :  { %931 = vpush %v691_v29  ;;  %v770_v8 = vrot.slane %v769_v63, 2 }
 0x485   :  { %v771_v52 = vadd.f32 %v770_v8, %v769_v63 }
 0x486   :  { %v832_v5 = vpop.xlane.xlu1 %831 }
 0x487   :  { %v816_v4 = vpop.xlane.xlu0 %815  ;;  %v833_v9 = vrot.slane %v832_v5, 4  ;;  %v772_v16 = vrot.slane %v771_v52, 1 }
 0x488   :  { %v817_v60 = vrot.slane %v816_v4, 4 }
 0x489   :  { %v834_v13 = vadd.f32 %v833_v9, %v832_v5  ;;  %v773_v27 = vadd.f32 %v772_v16, %v771_v52 }
 0x48a   :  { %v818_v11 = vadd.f32 %v817_v60, %v816_v4 }
 0x48b   :  { %v835_v19 = vrot.slane %v834_v13, 2 }
 0x48c   :  { %v819_v49 = vrot.slane %v818_v11, 2 }
 0x48d   :  { %v836_v25 = vadd.f32 %v835_v19, %v834_v13 }
 0x48e   :  { %v820_v23 = vadd.f32 %v819_v49, %v818_v11 }
 0x48f   :  { %v837_v39 = vrot.slane %v836_v25, 1 }
 0x490   :  { %v821_v30 = vrot.slane %v820_v23, 1 }
 0x491   :  { %v838_v3 = vadd.f32 %v837_v39, %v836_v25 }
 0x492   :  { %v822_v0 = vadd.f32 %v821_v30, %v820_v23 }
 0x497   :  { %v718_v7 = vpop.xlane.xlu2 %717 }
 0x498   :  { %v719_v37 = vrot.slane %v718_v7, 4 }
 0x49a   :  { %v720_v10 = vadd.f32 %v719_v37, %v718_v7 }
 0x49c   :  { %v721_v14 = vrot.slane %v720_v10, 2 }
 0x49e   :  { %v722_v15 = vadd.f32 %v721_v14, %v720_v10 }
 0x49f   :  { %v783_v17 = vpop.xlane.xlu2 %782 }
 0x4a0   :  { %v784_v20 = vrot.slane %v783_v17, 4  ;;  %v723_v58 = vrot.slane %v722_v15, 1 }
 0x4a2   :  { %v785_v21 = vadd.f32 %v784_v20, %v783_v17  ;;  %v724_v22 = vadd.f32 %v723_v58, %v722_v15 }
 0x4a4   :  { %v786_v26 = vrot.slane %v785_v21, 2  ;;  %933 = vpush %v724_v22 }
 0x4a5   :  { %935 = vpush %v740_v24 }
 0x4a6   :  { %v787_v28 = vadd.f32 %v786_v26, %v785_v21  ;;  %937 = vpush %v773_v27 }
 0x4a8   :  { %v788_v31 = vrot.slane %v787_v28, 1 }
 0x4aa   :  { %v789_v32 = vadd.f32 %v788_v31, %v787_v28 }
 0x4ac   :  { %939 = vpush %v789_v32 }
 0x4ad   :  { %941 = vpush %v822_v0 }
 0x4ae   :  { %943 = vpush %v838_v3 }
 0x4b3   :  { %s930_s3 = spop %929 }
 0x4b4   :  { %s932_s4 = spop %931 }
 0x4b5   :  { %s693_s22 = sadd.f32 %s932_s4, %s930_s3 }
 0x4b7   :  { %s702_s8 = smul.f32 %s1302_s9, %s693_s22 }
 0x4d5   :  { %s934_s23 = spop %933 }
 0x4d6   :  { %s936_s11 = spop %935 }
 0x4d7   :  { %s742_s24 = sadd.f32 %s936_s11, %s934_s23  ;;  %s938_s26 = spop %937 }
 0x4d9   :  { %s751_s5 = smul.f32 %s1304_s14, %s742_s24  ;;  %s861_s14 = sshll.u32 %s1076_s18, 4  ;;  %s862_s14 = int_to_ptr.vmem [resolvable:$true] %s861_s14 }
 0x4db   :  { %s752_s25 = sadd.f32 %s751_s5, %s702_s8 }
 0x4dd   :  { %s940_s0 = spop %939 }
 0x4de   :  { %s791_s7 = sadd.f32 %s940_s0, %s938_s26  ;;  %s942_s12 = spop %941 }
 0x4df   :  { %s944_s21 = spop %943 }
 0x4e0   :  { %s800_s30 = smul.f32 %s1308_s1, %s791_s7  ;;  %s840_s10 = sadd.f32 %s944_s21, %s942_s12 }
 0x4e2   :  { %s801_s20 = sadd.f32 %s800_s30, %s752_s25  ;;  %s849_s15 = smul.f32 %s1311_s6, %s840_s10 }
 0x4e4   :  { %s850_s27 = sadd.f32 %s849_s15, %s801_s20 }
 0x4e6   :  { %s851_s28 = smul.f32 0.5, %s850_s27 }
 0x4e8   :  { %s852_s29 = sadd.f32 %s851_s28, %s1363_s17 }
 0x4ea   :  { %v853_v35 = vstv %s852_s29 }
 0x4eb   :  { %855 = vst [vmem:[#allocation8] sm:$0x1] %v853_v35 }
 0x4ec   :  { %866 = dma.vmem_to_hbm [thread:$0]  %s862_s14, 16, %s864_s13, [#allocation5]  }
 0x4ed   :  { %1056 = dma.done.wait [#allocation5], 16  }
 0x4ee   :  { %1057 = vsyncadd [#allocation5], 4294967280 }
 0x4ef   :  { %871 = vsyncpa [#allocation4], 1 }
 0x4f0   :  { %872 = vsyncpa [#allocation7], 1 }
 0x4f1   :  { %873 = vsyncpa [#allocation5], 1 }

</bundles_post_ra>
